<compile_context>
chip_gen: v7x
topology: tpu7x:2x2x1
jax: 0.10.0
libtpu: 0.0.40
codegen_flags: <defaults>
</compile_context>

<pallas_src>
import functools

import jax
import jax.numpy as jnp
import numpy as np
from jax import lax
from jax.experimental import pallas as pl
from jax.experimental.pallas import tpu as pltpu


def _round_up(x, m):
    return ((x + m - 1) // m) * m


def _project(x_tile, w_ref, small_c):
    """Channel projection W @ x for a (C, TILE_N) tile.

    For tiny C the contraction is far too shallow to feed the MXU, so unroll
    into C broadcast-FMAs on the VPU; otherwise use a bf16 MXU dot with f32
    accumulation.
    TODO(synk): for 8 < C <= 32 the MXU contraction is still shallow on the
    256-deep v6e/v7x MXU; threshold kept at 8 pending a per-generation sweep.
    """
    if small_c:
        w = w_ref[...].astype(jnp.float32)                    # (O, C)
        xf = x_tile.astype(jnp.float32)                       # (C, T)
        acc = w[:, 0:1] * xf[0:1, :]
        for cc in range(1, xf.shape[0]):
            acc = acc + w[:, cc:cc + 1] * xf[cc:cc + 1, :]
        return acc
    return jnp.dot(w_ref[...], x_tile.astype(w_ref.dtype),
                   preferred_element_type=jnp.float32)


def _linear_attention_kernel(
        x_ref, wqkv_ref, wout_ref, par_ref,                  # inputs
        o_ref,                                                # output
        kmax, kden, svk, sq, gq, qs_stash, acoef, bcoef,      # scratch
        *, hidden, scale, n_real, tn, nt, eps, small_c, has_tail):
    ph = pl.program_id(1)
    it = pl.program_id(2)
    last = nt - 1

    # ------------------ phase 0: stream x once, accumulate ------------------
    @pl.when(ph == 0)
    def _phase0():
        @pl.when(it == 0)
        def _init():
            kmax[...] = jnp.full_like(kmax, -jnp.inf)
            kden[...] = jnp.zeros_like(kden)
            svk[...] = jnp.zeros_like(svk)
            sq[...] = jnp.zeros_like(sq)
            gq[...] = jnp.zeros_like(gq)

        def _accumulate(masked):
            x = x_ref[0]                                      # (C, T)
            qkv = _project(x, wqkv_ref, small_c)              # (3*hidden, T) f32
            q = qkv[0:hidden]
            k = qkv[hidden:2 * hidden]
            v = qkv[2 * hidden:3 * hidden]

            if masked:
                # Boundary block: columns past n_real hold unspecified data.
                # Mask BEFORE the running max / accumulations so garbage lanes
                # can never poison m_new or the context.
                col = lax.broadcasted_iota(jnp.int32, (1, tn), 1) + it * tn
                valid = col < n_real
                k = jnp.where(valid, k, -jnp.inf)
                v = jnp.where(valid, v, 0.0)

            # q: softmax over channels (local per spatial position), scale folded.
            qmax = jnp.max(q, axis=0, keepdims=True)
            pq = jnp.exp(q - qmax)
            inv_q = pl.reciprocal(jnp.sum(pq, axis=0, keepdims=True), approx=True)
            qs = pq * (scale * inv_q)
            if masked:
                qs = jnp.where(valid, qs, 0.0)
            qs_bf = qs.astype(jnp.bfloat16)
            qs_stash[it] = qs_bf                               # reused in phase 1
            sq[...] += jnp.sum(qs, axis=1, keepdims=True)      # (d, 1)
            gq[...] += lax.dot_general(                        # (d, d) = sum q q^T
                qs_bf, qs_bf, (((1,), (1,)), ((), ())),
                preferred_element_type=jnp.float32)

            # k: online softmax over the spatial axis.  Context is kept (d, e),
            # so the alpha rescale is a sublane-broadcast VPU FMA (no MXU on
            # the serial accumulator chain).
            m_new = jnp.maximum(kmax[...], jnp.max(k, axis=1, keepdims=True))
            alpha = jnp.exp(kmax[...] - m_new)                 # (d, 1)
            pk = jnp.exp(k - m_new)                            # masked cols -> 0
            kden[...] = alpha * kden[...] + jnp.sum(pk, axis=1, keepdims=True)
            vk = lax.dot_general(                              # (d, e)
                pk.astype(jnp.bfloat16), v.astype(jnp.bfloat16),
                (((1,), (1,)), ((), ())), preferred_element_type=jnp.float32)
            svk[...] = alpha * svk[...] + vk
            kmax[...] = m_new

        if has_tail and nt > 1:
            @pl.when(it != last)
            def _interior():
                _accumulate(False)

            @pl.when(it == last)
            def _tail():
                _accumulate(True)
        else:
            _accumulate(has_tail)

        @pl.when(it == last)
        def _finalize():
            inv_den = 1.0 / kden[...]                          # once per batch: exact
            ctx = inv_den * svk[...]                           # (d, e) context
            svk[...] = ctx                                     # reused by phase 1
            wf = wout_ref[...].astype(jnp.float32)             # (C, e)
            bias = par_ref[:, 0:1]
            gamma = par_ref[:, 1:2]
            beta = par_ref[:, 2:3]
            # GroupNorm(1, C) statistics of  y = Wout @ out + b  derived from
            # the first/second moments of the q-softmax (no extra data sweep):
            #   sum(y)   = 1_C^T Wout s1 + N * sum(b)
            #   sum(y^2) = tr(Wout Gram Wout^T) + 2 b^T Wout s1 + N |b|^2
            # with s1 = ctx^T (sum_n q_n) and Gram = ctx^T (sum_n q_n q_n^T) ctx.
            s1 = lax.dot_general(ctx, sq[...], (((0,), (0,)), ((), ())),
                                 preferred_element_type=jnp.float32)        # (e, 1)
            t = jnp.dot(gq[...], ctx, preferred_element_type=jnp.float32)    # (d, e)
            gram = lax.dot_general(ctx, t, (((0,), (0,)), ((), ())),
                                   preferred_element_type=jnp.float32)       # (e, e)
            ws1 = jnp.dot(wf, s1, preferred_element_type=jnp.float32)         # (C, 1)
            m_w = jnp.dot(wf, gram, preferred_element_type=jnp.float32)       # (C, e)
            n_f = jnp.float32(n_real)
            sum_y = jnp.sum(ws1) + n_f * jnp.sum(bias)
            sum_y2 = (jnp.sum(m_w * wf) + 2.0 * jnp.sum(bias * ws1)
                      + n_f * jnp.sum(bias * bias))
            cn = jnp.float32(wf.shape[0]) * n_f
            mean = sum_y / cn
            # TODO(synk): E[y^2]-E[y]^2 in f32 can lose precision for very
            # large |mean|/std; the clamp only guards the sign.
            var = jnp.maximum(sum_y2 / cn - mean * mean, 0.0)
            rstd = lax.rsqrt(var + eps)
            a = gamma * rstd
            acoef[...] = a                                     # folded GN scale
            bcoef[...] = beta + (bias - mean) * a              # conv bias + GN shift

    # ------------------ phase 1: produce lane-dense output ------------------
    @pl.when(ph == 1)
    def _phase1():
        qs = qs_stash[it]                                      # (d, T) bf16
        ctx = svk[...].astype(jnp.bfloat16)                    # (d, e)
        out = lax.dot_general(ctx, qs, (((0,), (0,)), ((), ())),
                              preferred_element_type=jnp.float32)   # (e, T)
        y = jnp.dot(wout_ref[...], out.astype(jnp.bfloat16),
                    preferred_element_type=jnp.float32)             # (C, T)
        o_ref[0] = (y * acoef[...] + bcoef[...]).astype(o_ref.dtype)


def linear_attention(x, wqkv, wout, bout, gamma, beta,
                     *, heads=1, dim_head=32, eps=1e-5, tile_n=1024,
                     out_dtype=None):
    if heads != 1:
        # TODO(synk): multi-head variant not needed by CondUnet (heads=1).
        raise NotImplementedError("linear_attention kernel supports heads == 1 only")

    b, c, l, h, w = x.shape
    n = l * h * w
    hidden = heads * dim_head
    scale = dim_head ** -0.5
    if out_dtype is None:
        out_dtype = x.dtype          # pass out_dtype=jnp.bfloat16 to halve writeback
    x_bytes = x.dtype.itemsize
    out_bytes = jnp.dtype(out_dtype).itemsize

    # Lane-dense spatial tile (multiple of 128), no wrapper-side padding of x.
    # Keep the double-buffered x + y tiles within a few MiB.
    tn = _round_up(min(tile_n, n), 128)
    while tn > 128 and 2 * c * tn * (x_bytes + out_bytes) > 4 * (1 << 20):
        tn = _round_up(tn // 2, 128)
    nt = pl.cdiv(n, tn)
    has_tail = (n % tn) != 0

    x2 = x.reshape(b, c, n)                                    # metadata-only reshape
    wqkv_bf = wqkv.astype(jnp.bfloat16)
    wout_bf = wout.astype(jnp.bfloat16)
    params = jnp.stack([bout.astype(jnp.float32),
                        gamma.astype(jnp.float32),
                        beta.astype(jnp.float32)], axis=1)     # (C, 3)

    small_c = c <= 8

    # VMEM budget (x/y tiles double-buffered, qs stash scales with N); clamp
    # to v7x's 64 MiB physical VMEM.
    est = (2 * c * tn * x_bytes + 2 * c * tn * out_bytes
           + nt * tn * hidden * 2
           + 8 * hidden * 128 * 4 + 2 * hidden * hidden * 4
           + 4 * (3 * hidden * c + c * hidden) * 2 + 2 * c * 3 * 4
           + (1 << 20))
    vmem_limit = int(min(64 * (1 << 20), max(8 * (1 << 20), 2 * est)))

    kern = functools.partial(
        _linear_attention_kernel, hidden=hidden, scale=scale, n_real=n,
        tn=tn, nt=nt, eps=eps, small_c=small_c, has_tail=has_tail)

    y = pl.pallas_call(
        kern,
        out_shape=jax.ShapeDtypeStruct((b, c, n), out_dtype),
        grid=(b, 2, nt),
        in_specs=[
            # x is streamed exactly once (phase 0); during phase 1 the block
            # index is pinned to the last tile so no extra DMAs are issued.
            pl.BlockSpec((1, c, tn),
                         lambda ib, ph, it: (ib, 0, it * (1 - ph) + (nt - 1) * ph)),
            pl.BlockSpec((3 * hidden, c), lambda ib, ph, it: (0, 0)),   # W_qkv bf16
            pl.BlockSpec((c, hidden), lambda ib, ph, it: (0, 0)),       # W_out bf16
            pl.BlockSpec((c, 3), lambda ib, ph, it: (0, 0)),            # [b, gamma, beta]
        ],
        # During phase 0 the output block index stays at tile 0, so nothing is
        # written back until phase 1 overwrites the buffer with real values;
        # OOB lanes of the final partial tile are dropped by Pallas.
        out_specs=pl.BlockSpec((1, c, tn), lambda ib, ph, it: (ib, 0, it * ph)),
        scratch_shapes=[
            pltpu.VMEM((hidden, 1), jnp.float32),          # running max of k
            pltpu.VMEM((hidden, 1), jnp.float32),          # k-softmax denominator
            pltpu.VMEM((hidden, hidden), jnp.float32),     # context accumulator (d, e)
            pltpu.VMEM((hidden, 1), jnp.float32),          # sum_n q
            pltpu.VMEM((hidden, hidden), jnp.float32),     # sum_n q q^T
            pltpu.VMEM((nt, hidden, tn), jnp.bfloat16),    # qs stash (x read once)
            pltpu.VMEM((c, 1), jnp.float32),               # folded GN scale
            pltpu.VMEM((c, 1), jnp.float32),               # folded GN shift + bias
        ],
        compiler_params=pltpu.CompilerParams(
            dimension_semantics=("parallel", "arbitrary", "arbitrary"),
            vmem_limit_bytes=vmem_limit),
    )(x2, wqkv_bf, wout_bf, params)

    return y.reshape(b, c, l, h, w)


def linear_attention_ref(x, wqkv, wout, bout, gamma, beta,
                         *, heads=1, dim_head=32, eps=1e-5):
    """Pure-JAX reference matching the PyTorch forward.

    Mirrors the kernel's bf16 storage of the conv weights so the comparison
    isolates kernel error rather than weight-rounding error.
    """
    b, c, l, h, w = x.shape
    n = l * h * w
    hidden = heads * dim_head
    scale = dim_head ** -0.5

    xf = x.astype(jnp.float32).reshape(b, c, n)
    wq = wqkv.astype(jnp.bfloat16).astype(jnp.float32)
    wo = wout.astype(jnp.bfloat16).astype(jnp.float32)

    qkv = jnp.einsum('oc,bcn->bon', wq, xf)
    q, k, v = jnp.split(qkv, 3, axis=1)                       # heads == 1
    q = jax.nn.softmax(q, axis=1) * scale
    k = jax.nn.softmax(k, axis=2)
    context = jnp.einsum('bdn,ben->bde', k, v)
    out = jnp.einsum('bde,bdn->ben', context, q)
    y = jnp.einsum('oc,bcn->bon', wo, out) + bout.reshape(1, c, 1)
    mean = y.mean(axis=(1, 2), keepdims=True)
    var = ((y - mean) ** 2).mean(axis=(1, 2), keepdims=True)
    y = (y - mean) / jnp.sqrt(var + eps)
    y = y * gamma.reshape(1, c, 1) + beta.reshape(1, c, 1)
    return y.reshape(b, c, l, h, w)


if __name__ == "__main__":
    HEADS, DIM_HEAD = 1, 32
    HIDDEN = HEADS * DIM_HEAD

    def make_inputs(key, b, c, l, h, w):
        kx, kq, ko, kb, kg, kbe = jax.random.split(key, 6)
        x = jax.random.normal(kx, (b, c, l, h, w), dtype=jnp.float32)
        wqkv = 0.2 * jax.random.normal(kq, (3 * HIDDEN, c), dtype=jnp.float32)
        wout = 0.2 * jax.random.normal(ko, (c, HIDDEN), dtype=jnp.float32)
        bout = 0.1 * jax.random.normal(kb, (c,), dtype=jnp.float32)
        gamma = 1.0 + 0.1 * jax.random.normal(kg, (c,), dtype=jnp.float32)
        beta = 0.1 * jax.random.normal(kbe, (c,), dtype=jnp.float32)
        return x, wqkv, wout, bout, gamma, beta

    key = jax.random.PRNGKey(0)
    k1, k2 = jax.random.split(key)

    # Shapes consistent with the UNet's LinearAttention (dim=4 channels,
    # heads=1, dim_head=32).
    #   case 1: N = 6*8*9 = 432  -> partial (masked) last tile for both tiles
    #   case 2: N = 4*8*8 = 256  -> exact multi-tile (unmasked fast path)
    cases = [
        (k1, (2, 4, 6, 8, 9), (128, 1024)),
        (k2, (2, 4, 4, 8, 8), (128,)),
    ]
    for kk, (B, C, L, H, W), tiles in cases:
        args = make_inputs(kk, B, C, L, H, W)
        ref = linear_attention_ref(*args, heads=HEADS, dim_head=DIM_HEAD)
        for tile in tiles:
            out = linear_attention(*args, heads=HEADS, dim_head=DIM_HEAD,
                                   tile_n=tile)
            out = jax.block_until_ready(out)
            # Tolerance covers bf16 MXU operands (weights, qs, pk/v, out, ctx)
            # and the approximate EUP reciprocals in the softmax denominators.
            np.testing.assert_allclose(np.asarray(out), np.asarray(ref),
                                       rtol=2e-2, atol=2e-2)

    print("KERNEL_OK")
</pallas_src>

<mosaic_0001>
module attributes {stable_mosaic.version = 11 : i64} {
  func.func @_linear_attention_kernel(%arg0: i32, %arg1: i32, %arg2: i32, %arg3: memref<1x4x128xf32, #tpu.memory_space<vmem>>, %arg4: memref<96x4xbf16, #tpu.memory_space<vmem>>, %arg5: memref<4x32xbf16, #tpu.memory_space<vmem>>, %arg6: memref<4x3xf32, #tpu.memory_space<vmem>>, %arg7: memref<1x4x128xf32, #tpu.memory_space<vmem>>, %arg8: memref<32x1xf32, #tpu.memory_space<vmem>>, %arg9: memref<32x1xf32, #tpu.memory_space<vmem>>, %arg10: memref<32x32xf32, #tpu.memory_space<vmem>>, %arg11: memref<32x1xf32, #tpu.memory_space<vmem>>, %arg12: memref<32x32xf32, #tpu.memory_space<vmem>>, %arg13: memref<4x32x128xbf16, #tpu.memory_space<vmem>>, %arg14: memref<4x1xf32, #tpu.memory_space<vmem>>, %arg15: memref<4x1xf32, #tpu.memory_space<vmem>>) attributes {dimension_semantics = [#tpu.dimension_semantics<parallel>, #tpu.dimension_semantics<arbitrary>, #tpu.dimension_semantics<arbitrary>], iteration_bounds = array<i64: 2, 2, 4>, scalar_prefetch = 0 : i64, scratch_operands = 8 : i64, tpu.core_type = #tpu.core_type<tc>, window_params = [{transform_indices = @transform_0, window_bounds = array<i64: 1, 4, 128>}, {pipeline_mode = #tpu.pipeline_mode<synchronous>, transform_indices = @transform_1, window_bounds = array<i64: 96, 4>}, {pipeline_mode = #tpu.pipeline_mode<synchronous>, transform_indices = @transform_2, window_bounds = array<i64: 4, 32>}, {pipeline_mode = #tpu.pipeline_mode<synchronous>, transform_indices = @transform_3, window_bounds = array<i64: 4, 3>}, {transform_indices = @transform_4, window_bounds = array<i64: 1, 4, 128>}]} {
    %c0_i32 = arith.constant 0 : i32
    %0 = arith.cmpi eq, %arg1, %c0_i32 : i32
    %1 = arith.extui %0 : i1 to i32
    %c0_i32_0 = arith.constant 0 : i32
    %2 = arith.cmpi ne, %1, %c0_i32_0 : i32
    scf.if %2 {
      %c0_i32_2 = arith.constant 0 : i32
      %6 = arith.cmpi eq, %arg2, %c0_i32_2 : i32
      %7 = arith.extui %6 : i1 to i32
      %c0_i32_3 = arith.constant 0 : i32
      %8 = arith.cmpi ne, %7, %c0_i32_3 : i32
      scf.if %8 {
        %cst = arith.constant 0xFF800000 : f32
        %18 = vector.broadcast %cst : f32 to vector<32x1xf32>
        %c0 = arith.constant 0 : index
        %c0_9 = arith.constant 0 : index
        %19 = vector.load %arg8[%c0, %c0_9] : memref<32x1xf32, #tpu.memory_space<vmem>>, vector<32x1xf32>
        tpu.vector_store %arg8[%c0, %c0_9], %18 {strides = array<i32>} : memref<32x1xf32, #tpu.memory_space<vmem>>, vector<32x1xf32>,
        %cst_10 = arith.constant 0.000000e+00 : f32
        %20 = vector.broadcast %cst_10 : f32 to vector<32x1xf32>
        %c0_11 = arith.constant 0 : index
        %c0_12 = arith.constant 0 : index
        %21 = vector.load %arg9[%c0_11, %c0_12] : memref<32x1xf32, #tpu.memory_space<vmem>>, vector<32x1xf32>
        tpu.vector_store %arg9[%c0_11, %c0_12], %20 {strides = array<i32>} : memref<32x1xf32, #tpu.memory_space<vmem>>, vector<32x1xf32>,
        %cst_13 = arith.constant 0.000000e+00 : f32
        %22 = vector.broadcast %cst_13 : f32 to vector<32x32xf32>
        %c0_14 = arith.constant 0 : index
        %c0_15 = arith.constant 0 : index
        %23 = vector.load %arg10[%c0_14, %c0_15] : memref<32x32xf32, #tpu.memory_space<vmem>>, vector<32x32xf32>
        tpu.vector_store %arg10[%c0_14, %c0_15], %22 {strides = array<i32>} : memref<32x32xf32, #tpu.memory_space<vmem>>, vector<32x32xf32>,
        %cst_16 = arith.constant 0.000000e+00 : f32
        %24 = vector.broadcast %cst_16 : f32 to vector<32x1xf32>
        %c0_17 = arith.constant 0 : index
        %c0_18 = arith.constant 0 : index
        %25 = vector.load %arg11[%c0_17, %c0_18] : memref<32x1xf32, #tpu.memory_space<vmem>>, vector<32x1xf32>
        tpu.vector_store %arg11[%c0_17, %c0_18], %24 {strides = array<i32>} : memref<32x1xf32, #tpu.memory_space<vmem>>, vector<32x1xf32>,
        %cst_19 = arith.constant 0.000000e+00 : f32
        %26 = vector.broadcast %cst_19 : f32 to vector<32x32xf32>
        %c0_20 = arith.constant 0 : index
        %c0_21 = arith.constant 0 : index
        %27 = vector.load %arg12[%c0_20, %c0_21] : memref<32x32xf32, #tpu.memory_space<vmem>>, vector<32x32xf32>
        tpu.vector_store %arg12[%c0_20, %c0_21], %26 {strides = array<i32>} : memref<32x32xf32, #tpu.memory_space<vmem>>, vector<32x32xf32>,
      } else {
      }
      %c3_i32 = arith.constant 3 : i32
      %9 = arith.cmpi ne, %arg2, %c3_i32 : i32
      %10 = arith.extui %9 : i1 to i32
      %c0_i32_4 = arith.constant 0 : i32
      %11 = arith.cmpi ne, %10, %c0_i32_4 : i32
      scf.if %11 {
        %c0 = arith.constant 0 : index
        %c0_9 = arith.constant 0 : index
        %c0_10 = arith.constant 0 : index
        %18 = vector.load %arg3[%c0, %c0_9, %c0_10] : memref<1x4x128xf32, #tpu.memory_space<vmem>>, vector<1x4x128xf32>
        %19 = vector.shape_cast %18 : vector<1x4x128xf32> to vector<4x128xf32>
        %c0_11 = arith.constant 0 : index
        %c0_12 = arith.constant 0 : index
        %20 = vector.load %arg4[%c0_11, %c0_12] : memref<96x4xbf16, #tpu.memory_space<vmem>>, vector<96x4xbf16>
        %21 = arith.extf %20 : vector<96x4xbf16> to vector<96x4xf32>
        %22 = vector.extract_strided_slice %21 {offsets = [0, 0], sizes = [96, 1], strides = [1, 1]} : vector<96x4xf32> to vector<96x1xf32>
        %23 = vector.extract_strided_slice %19 {offsets = [0, 0], sizes = [1, 128], strides = [1, 1]} : vector<4x128xf32> to vector<1x128xf32>
        %24 = vector.broadcast %22 : vector<96x1xf32> to vector<96x128xf32>
        %25 = vector.broadcast %23 : vector<1x128xf32> to vector<96x128xf32>
        %26 = arith.mulf %24, %25 : vector<96x128xf32>
        %27 = vector.extract_strided_slice %21 {offsets = [0, 1], sizes = [96, 1], strides = [1, 1]} : vector<96x4xf32> to vector<96x1xf32>
        %28 = vector.extract_strided_slice %19 {offsets = [1, 0], sizes = [1, 128], strides = [1, 1]} : vector<4x128xf32> to vector<1x128xf32>
        %29 = vector.broadcast %27 : vector<96x1xf32> to vector<96x128xf32>
        %30 = vector.broadcast %28 : vector<1x128xf32> to vector<96x128xf32>
        %31 = arith.mulf %29, %30 : vector<96x128xf32>
        %32 = arith.addf %26, %31 : vector<96x128xf32>
        %33 = vector.extract_strided_slice %21 {offsets = [0, 2], sizes = [96, 1], strides = [1, 1]} : vector<96x4xf32> to vector<96x1xf32>
        %34 = vector.extract_strided_slice %19 {offsets = [2, 0], sizes = [1, 128], strides = [1, 1]} : vector<4x128xf32> to vector<1x128xf32>
        %35 = vector.broadcast %33 : vector<96x1xf32> to vector<96x128xf32>
        %36 = vector.broadcast %34 : vector<1x128xf32> to vector<96x128xf32>
        %37 = arith.mulf %35, %36 : vector<96x128xf32>
        %38 = arith.addf %32, %37 : vector<96x128xf32>
        %39 = vector.extract_strided_slice %21 {offsets = [0, 3], sizes = [96, 1], strides = [1, 1]} : vector<96x4xf32> to vector<96x1xf32>
        %40 = vector.extract_strided_slice %19 {offsets = [3, 0], sizes = [1, 128], strides = [1, 1]} : vector<4x128xf32> to vector<1x128xf32>
        %41 = vector.broadcast %39 : vector<96x1xf32> to vector<96x128xf32>
        %42 = vector.broadcast %40 : vector<1x128xf32> to vector<96x128xf32>
        %43 = arith.mulf %41, %42 : vector<96x128xf32>
        %44 = arith.addf %38, %43 : vector<96x128xf32>
        %45 = vector.extract_strided_slice %44 {offsets = [0, 0], sizes = [32, 128], strides = [1, 1]} : vector<96x128xf32> to vector<32x128xf32>
        %46 = vector.extract_strided_slice %44 {offsets = [32, 0], sizes = [32, 128], strides = [1, 1]} : vector<96x128xf32> to vector<32x128xf32>
        %47 = vector.extract_strided_slice %44 {offsets = [64, 0], sizes = [32, 128], strides = [1, 1]} : vector<96x128xf32> to vector<32x128xf32>
        %cst = arith.constant dense<0xFF800000> : vector<128xf32>
        %48 = vector.multi_reduction <maximumf>, %45, %cst [0] : vector<32x128xf32> to vector<128xf32>
        %49 = vector.shape_cast %48 : vector<128xf32> to vector<1x128xf32>
        %50 = vector.broadcast %49 : vector<1x128xf32> to vector<32x128xf32>
        %51 = arith.subf %45, %50 : vector<32x128xf32>
        %52 = math.exp %51 : vector<32x128xf32>
        %cst_13 = arith.constant dense<0.000000e+00> : vector<128xf32>
        %53 = vector.multi_reduction <add>, %52, %cst_13 [0] : vector<32x128xf32> to vector<128xf32>
        %54 = vector.shape_cast %53 : vector<128xf32> to vector<1x128xf32>
        %55 = tpu.reciprocal %54 {approx = true} : vector<1x128xf32> -> vector<1x128xf32>
        %cst_14 = arith.constant 0.176776692 : f32
        %56 = vector.broadcast %cst_14 : f32 to vector<1x128xf32>
        %57 = arith.mulf %56, %55 : vector<1x128xf32>
        %58 = vector.broadcast %57 : vector<1x128xf32> to vector<32x128xf32>
        %59 = arith.mulf %52, %58 : vector<32x128xf32>
        %60 = arith.truncf %59 : vector<32x128xf32> to vector<32x128xbf16>
        %61 = arith.index_cast %arg2 : i32 to index
        %c0_15 = arith.constant 0 : index
        %c0_16 = arith.constant 0 : index
        %62 = vector.load %arg13[%61, %c0_15, %c0_16] : memref<4x32x128xbf16, #tpu.memory_space<vmem>>, vector<1x32x128xbf16>
        %63 = vector.shape_cast %62 : vector<1x32x128xbf16> to vector<32x128xbf16>
        %64 = vector.shape_cast %60 : vector<32x128xbf16> to vector<1x32x128xbf16>
        tpu.vector_store %arg13[%61, %c0_15, %c0_16], %64 {strides = array<i32>} : memref<4x32x128xbf16, #tpu.memory_space<vmem>>, vector<1x32x128xbf16>,
        %c0_17 = arith.constant 0 : index
        %c0_18 = arith.constant 0 : index
        %65 = vector.load %arg11[%c0_17, %c0_18] : memref<32x1xf32, #tpu.memory_space<vmem>>, vector<32x1xf32>
        %cst_19 = arith.constant dense<0.000000e+00> : vector<32xf32>
        %66 = vector.multi_reduction <add>, %59, %cst_19 [1] : vector<32x128xf32> to vector<32xf32>
        %67 = vector.shape_cast %66 : vector<32xf32> to vector<32x1xf32>
        %68 = arith.addf %65, %67 : vector<32x1xf32>
        %c0_20 = arith.constant 0 : index
        %c0_21 = arith.constant 0 : index
        %69 = vector.load %arg11[%c0_20, %c0_21] : memref<32x1xf32, #tpu.memory_space<vmem>>, vector<32x1xf32>
        tpu.vector_store %arg11[%c0_20, %c0_21], %68 {strides = array<i32>} : memref<32x1xf32, #tpu.memory_space<vmem>>, vector<32x1xf32>,
        %c0_22 = arith.constant 0 : index
        %c0_23 = arith.constant 0 : index
        %70 = vector.load %arg12[%c0_22, %c0_23] : memref<32x32xf32, #tpu.memory_space<vmem>>, vector<32x32xf32>
        %cst_24 = arith.constant dense<0.000000e+00> : vector<32x32xf32>
        %71 = tpu.matmul %60, %60, %cst_24 {dimension_numbers = #tpu.dot_dimension_numbers<[1], [1], [0], [0], [0, 0, 1, 0], [], []>} : vector<32x128xbf16>, vector<32x128xbf16>, vector<32x32xf32> -> vector<32x32xf32>
        %72 = arith.addf %70, %71 : vector<32x32xf32>
        %c0_25 = arith.constant 0 : index
        %c0_26 = arith.constant 0 : index
        %73 = vector.load %arg12[%c0_25, %c0_26] : memref<32x32xf32, #tpu.memory_space<vmem>>, vector<32x32xf32>
        tpu.vector_store %arg12[%c0_25, %c0_26], %72 {strides = array<i32>} : memref<32x32xf32, #tpu.memory_space<vmem>>, vector<32x32xf32>,
        %c0_27 = arith.constant 0 : index
        %c0_28 = arith.constant 0 : index
        %74 = vector.load %arg8[%c0_27, %c0_28] : memref<32x1xf32, #tpu.memory_space<vmem>>, vector<32x1xf32>
        %cst_29 = arith.constant dense<0xFF800000> : vector<32xf32>
        %75 = vector.multi_reduction <maximumf>, %46, %cst_29 [1] : vector<32x128xf32> to vector<32xf32>
        %76 = vector.shape_cast %75 : vector<32xf32> to vector<32x1xf32>
        %77 = arith.maximumf %74, %76 : vector<32x1xf32>
        %c0_30 = arith.constant 0 : index
        %c0_31 = arith.constant 0 : index
        %78 = vector.load %arg8[%c0_30, %c0_31] : memref<32x1xf32, #tpu.memory_space<vmem>>, vector<32x1xf32>
        %79 = arith.subf %78, %77 : vector<32x1xf32>
        %80 = math.exp %79 : vector<32x1xf32>
        %81 = vector.broadcast %77 : vector<32x1xf32> to vector<32x128xf32>
        %82 = arith.subf %46, %81 : vector<32x128xf32>
        %83 = math.exp %82 : vector<32x128xf32>
        %c0_32 = arith.constant 0 : index
        %c0_33 = arith.constant 0 : index
        %84 = vector.load %arg9[%c0_32, %c0_33] : memref<32x1xf32, #tpu.memory_space<vmem>>, vector<32x1xf32>
        %85 = arith.mulf %80, %84 : vector<32x1xf32>
        %cst_34 = arith.constant dense<0.000000e+00> : vector<32xf32>
        %86 = vector.multi_reduction <add>, %83, %cst_34 [1] : vector<32x128xf32> to vector<32xf32>
        %87 = vector.shape_cast %86 : vector<32xf32> to vector<32x1xf32>
        %88 = arith.addf %85, %87 : vector<32x1xf32>
        %c0_35 = arith.constant 0 : index
        %c0_36 = arith.constant 0 : index
        %89 = vector.load %arg9[%c0_35, %c0_36] : memref<32x1xf32, #tpu.memory_space<vmem>>, vector<32x1xf32>
        tpu.vector_store %arg9[%c0_35, %c0_36], %88 {strides = array<i32>} : memref<32x1xf32, #tpu.memory_space<vmem>>, vector<32x1xf32>,
        %90 = arith.truncf %83 : vector<32x128xf32> to vector<32x128xbf16>
        %91 = arith.truncf %47 : vector<32x128xf32> to vector<32x128xbf16>
        %cst_37 = arith.constant dense<0.000000e+00> : vector<32x32xf32>
        %92 = tpu.matmul %90, %91, %cst_37 {dimension_numbers = #tpu.dot_dimension_numbers<[1], [1], [0], [0], [0, 0, 1, 0], [], []>} : vector<32x128xbf16>, vector<32x128xbf16>, vector<32x32xf32> -> vector<32x32xf32>
        %c0_38 = arith.constant 0 : index
        %c0_39 = arith.constant 0 : index
        %93 = vector.load %arg10[%c0_38, %c0_39] : memref<32x32xf32, #tpu.memory_space<vmem>>, vector<32x32xf32>
        %94 = vector.broadcast %80 : vector<32x1xf32> to vector<32x32xf32>
        %95 = arith.mulf %94, %93 : vector<32x32xf32>
        %96 = arith.addf %95, %92 : vector<32x32xf32>
        %c0_40 = arith.constant 0 : index
        %c0_41 = arith.constant 0 : index
        %97 = vector.load %arg10[%c0_40, %c0_41] : memref<32x32xf32, #tpu.memory_space<vmem>>, vector<32x32xf32>
        tpu.vector_store %arg10[%c0_40, %c0_41], %96 {strides = array<i32>} : memref<32x32xf32, #tpu.memory_space<vmem>>, vector<32x32xf32>,
        %c0_42 = arith.constant 0 : index
        %c0_43 = arith.constant 0 : index
        %98 = vector.load %arg8[%c0_42, %c0_43] : memref<32x1xf32, #tpu.memory_space<vmem>>, vector<32x1xf32>
        tpu.vector_store %arg8[%c0_42, %c0_43], %77 {strides = array<i32>} : memref<32x1xf32, #tpu.memory_space<vmem>>, vector<32x1xf32>,
      } else {
      }
      %c3_i32_5 = arith.constant 3 : i32
      %12 = arith.cmpi eq, %arg2, %c3_i32_5 : i32
      %13 = arith.extui %12 : i1 to i32
      %c0_i32_6 = arith.constant 0 : i32
      %14 = arith.cmpi ne, %13, %c0_i32_6 : i32
      scf.if %14 {
        %c0 = arith.constant 0 : index
        %c0_9 = arith.constant 0 : index
        %c0_10 = arith.constant 0 : index
        %18 = vector.load %arg3[%c0, %c0_9, %c0_10] : memref<1x4x128xf32, #tpu.memory_space<vmem>>, vector<1x4x128xf32>
        %19 = vector.shape_cast %18 : vector<1x4x128xf32> to vector<4x128xf32>
        %c0_11 = arith.constant 0 : index
        %c0_12 = arith.constant 0 : index
        %20 = vector.load %arg4[%c0_11, %c0_12] : memref<96x4xbf16, #tpu.memory_space<vmem>>, vector<96x4xbf16>
        %21 = arith.extf %20 : vector<96x4xbf16> to vector<96x4xf32>
        %22 = vector.extract_strided_slice %21 {offsets = [0, 0], sizes = [96, 1], strides = [1, 1]} : vector<96x4xf32> to vector<96x1xf32>
        %23 = vector.extract_strided_slice %19 {offsets = [0, 0], sizes = [1, 128], strides = [1, 1]} : vector<4x128xf32> to vector<1x128xf32>
        %24 = vector.broadcast %22 : vector<96x1xf32> to vector<96x128xf32>
        %25 = vector.broadcast %23 : vector<1x128xf32> to vector<96x128xf32>
        %26 = arith.mulf %24, %25 : vector<96x128xf32>
        %27 = vector.extract_strided_slice %21 {offsets = [0, 1], sizes = [96, 1], strides = [1, 1]} : vector<96x4xf32> to vector<96x1xf32>
        %28 = vector.extract_strided_slice %19 {offsets = [1, 0], sizes = [1, 128], strides = [1, 1]} : vector<4x128xf32> to vector<1x128xf32>
        %29 = vector.broadcast %27 : vector<96x1xf32> to vector<96x128xf32>
        %30 = vector.broadcast %28 : vector<1x128xf32> to vector<96x128xf32>
        %31 = arith.mulf %29, %30 : vector<96x128xf32>
        %32 = arith.addf %26, %31 : vector<96x128xf32>
        %33 = vector.extract_strided_slice %21 {offsets = [0, 2], sizes = [96, 1], strides = [1, 1]} : vector<96x4xf32> to vector<96x1xf32>
        %34 = vector.extract_strided_slice %19 {offsets = [2, 0], sizes = [1, 128], strides = [1, 1]} : vector<4x128xf32> to vector<1x128xf32>
        %35 = vector.broadcast %33 : vector<96x1xf32> to vector<96x128xf32>
        %36 = vector.broadcast %34 : vector<1x128xf32> to vector<96x128xf32>
        %37 = arith.mulf %35, %36 : vector<96x128xf32>
        %38 = arith.addf %32, %37 : vector<96x128xf32>
        %39 = vector.extract_strided_slice %21 {offsets = [0, 3], sizes = [96, 1], strides = [1, 1]} : vector<96x4xf32> to vector<96x1xf32>
        %40 = vector.extract_strided_slice %19 {offsets = [3, 0], sizes = [1, 128], strides = [1, 1]} : vector<4x128xf32> to vector<1x128xf32>
        %41 = vector.broadcast %39 : vector<96x1xf32> to vector<96x128xf32>
        %42 = vector.broadcast %40 : vector<1x128xf32> to vector<96x128xf32>
        %43 = arith.mulf %41, %42 : vector<96x128xf32>
        %44 = arith.addf %38, %43 : vector<96x128xf32>
        %45 = vector.extract_strided_slice %44 {offsets = [0, 0], sizes = [32, 128], strides = [1, 1]} : vector<96x128xf32> to vector<32x128xf32>
        %46 = vector.extract_strided_slice %44 {offsets = [32, 0], sizes = [32, 128], strides = [1, 1]} : vector<96x128xf32> to vector<32x128xf32>
        %47 = vector.extract_strided_slice %44 {offsets = [64, 0], sizes = [32, 128], strides = [1, 1]} : vector<96x128xf32> to vector<32x128xf32>
        %48 = tpu.iota {dimensions = array<i32: 1>} : vector<1x128xi32>
        %c128_i32 = arith.constant 128 : i32
        %49 = arith.muli %arg2, %c128_i32 : i32
        %50 = vector.broadcast %49 : i32 to vector<1x128xi32>
        %51 = arith.addi %48, %50 : vector<1x128xi32>
        %c432_i32 = arith.constant 432 : i32
        %52 = vector.broadcast %c432_i32 : i32 to vector<1x128xi32>
        %53 = arith.cmpi slt, %51, %52 : vector<1x128xi32>
        %cst = arith.constant 0xFF800000 : f32
        %54 = vector.shape_cast %53 : vector<1x128xi1> to vector<1x128xi1>
        %55 = vector.broadcast %54 : vector<1x128xi1> to vector<32x128xi1>
        %56 = vector.broadcast %cst : f32 to vector<32x128xf32>
        %57 = arith.select %55, %46, %56 : vector<32x128xi1>, vector<32x128xf32>
        %cst_13 = arith.constant 0.000000e+00 : f32
        %58 = vector.shape_cast %53 : vector<1x128xi1> to vector<1x128xi1>
        %59 = vector.broadcast %58 : vector<1x128xi1> to vector<32x128xi1>
        %60 = vector.broadcast %cst_13 : f32 to vector<32x128xf32>
        %61 = arith.select %59, %47, %60 : vector<32x128xi1>, vector<32x128xf32>
        %cst_14 = arith.constant dense<0xFF800000> : vector<128xf32>
        %62 = vector.multi_reduction <maximumf>, %45, %cst_14 [0] : vector<32x128xf32> to vector<128xf32>
        %63 = vector.shape_cast %62 : vector<128xf32> to vector<1x128xf32>
        %64 = vector.broadcast %63 : vector<1x128xf32> to vector<32x128xf32>
        %65 = arith.subf %45, %64 : vector<32x128xf32>
        %66 = math.exp %65 : vector<32x128xf32>
        %cst_15 = arith.constant dense<0.000000e+00> : vector<128xf32>
        %67 = vector.multi_reduction <add>, %66, %cst_15 [0] : vector<32x128xf32> to vector<128xf32>
        %68 = vector.shape_cast %67 : vector<128xf32> to vector<1x128xf32>
        %69 = tpu.reciprocal %68 {approx = true} : vector<1x128xf32> -> vector<1x128xf32>
        %cst_16 = arith.constant 0.176776692 : f32
        %70 = vector.broadcast %cst_16 : f32 to vector<1x128xf32>
        %71 = arith.mulf %70, %69 : vector<1x128xf32>
        %72 = vector.broadcast %71 : vector<1x128xf32> to vector<32x128xf32>
        %73 = arith.mulf %66, %72 : vector<32x128xf32>
        %cst_17 = arith.constant 0.000000e+00 : f32
        %74 = vector.shape_cast %53 : vector<1x128xi1> to vector<1x128xi1>
        %75 = vector.broadcast %74 : vector<1x128xi1> to vector<32x128xi1>
        %76 = vector.broadcast %cst_17 : f32 to vector<32x128xf32>
        %77 = arith.select %75, %73, %76 : vector<32x128xi1>, vector<32x128xf32>
        %78 = arith.truncf %77 : vector<32x128xf32> to vector<32x128xbf16>
        %79 = arith.index_cast %arg2 : i32 to index
        %c0_18 = arith.constant 0 : index
        %c0_19 = arith.constant 0 : index
        %80 = vector.load %arg13[%79, %c0_18, %c0_19] : memref<4x32x128xbf16, #tpu.memory_space<vmem>>, vector<1x32x128xbf16>
        %81 = vector.shape_cast %80 : vector<1x32x128xbf16> to vector<32x128xbf16>
        %82 = vector.shape_cast %78 : vector<32x128xbf16> to vector<1x32x128xbf16>
        tpu.vector_store %arg13[%79, %c0_18, %c0_19], %82 {strides = array<i32>} : memref<4x32x128xbf16, #tpu.memory_space<vmem>>, vector<1x32x128xbf16>,
        %c0_20 = arith.constant 0 : index
        %c0_21 = arith.constant 0 : index
        %83 = vector.load %arg11[%c0_20, %c0_21] : memref<32x1xf32, #tpu.memory_space<vmem>>, vector<32x1xf32>
        %cst_22 = arith.constant dense<0.000000e+00> : vector<32xf32>
        %84 = vector.multi_reduction <add>, %77, %cst_22 [1] : vector<32x128xf32> to vector<32xf32>
        %85 = vector.shape_cast %84 : vector<32xf32> to vector<32x1xf32>
        %86 = arith.addf %83, %85 : vector<32x1xf32>
        %c0_23 = arith.constant 0 : index
        %c0_24 = arith.constant 0 : index
        %87 = vector.load %arg11[%c0_23, %c0_24] : memref<32x1xf32, #tpu.memory_space<vmem>>, vector<32x1xf32>
        tpu.vector_store %arg11[%c0_23, %c0_24], %86 {strides = array<i32>} : memref<32x1xf32, #tpu.memory_space<vmem>>, vector<32x1xf32>,
        %c0_25 = arith.constant 0 : index
        %c0_26 = arith.constant 0 : index
        %88 = vector.load %arg12[%c0_25, %c0_26] : memref<32x32xf32, #tpu.memory_space<vmem>>, vector<32x32xf32>
        %cst_27 = arith.constant dense<0.000000e+00> : vector<32x32xf32>
        %89 = tpu.matmul %78, %78, %cst_27 {dimension_numbers = #tpu.dot_dimension_numbers<[1], [1], [0], [0], [0, 0, 1, 0], [], []>} : vector<32x128xbf16>, vector<32x128xbf16>, vector<32x32xf32> -> vector<32x32xf32>
        %90 = arith.addf %88, %89 : vector<32x32xf32>
        %c0_28 = arith.constant 0 : index
        %c0_29 = arith.constant 0 : index
        %91 = vector.load %arg12[%c0_28, %c0_29] : memref<32x32xf32, #tpu.memory_space<vmem>>, vector<32x32xf32>
        tpu.vector_store %arg12[%c0_28, %c0_29], %90 {strides = array<i32>} : memref<32x32xf32, #tpu.memory_space<vmem>>, vector<32x32xf32>,
        %c0_30 = arith.constant 0 : index
        %c0_31 = arith.constant 0 : index
        %92 = vector.load %arg8[%c0_30, %c0_31] : memref<32x1xf32, #tpu.memory_space<vmem>>, vector<32x1xf32>
        %cst_32 = arith.constant dense<0xFF800000> : vector<32xf32>
        %93 = vector.multi_reduction <maximumf>, %57, %cst_32 [1] : vector<32x128xf32> to vector<32xf32>
        %94 = vector.shape_cast %93 : vector<32xf32> to vector<32x1xf32>
        %95 = arith.maximumf %92, %94 : vector<32x1xf32>
        %c0_33 = arith.constant 0 : index
        %c0_34 = arith.constant 0 : index
        %96 = vector.load %arg8[%c0_33, %c0_34] : memref<32x1xf32, #tpu.memory_space<vmem>>, vector<32x1xf32>
        %97 = arith.subf %96, %95 : vector<32x1xf32>
        %98 = math.exp %97 : vector<32x1xf32>
        %99 = vector.broadcast %95 : vector<32x1xf32> to vector<32x128xf32>
        %100 = arith.subf %57, %99 : vector<32x128xf32>
        %101 = math.exp %100 : vector<32x128xf32>
        %c0_35 = arith.constant 0 : index
        %c0_36 = arith.constant 0 : index
        %102 = vector.load %arg9[%c0_35, %c0_36] : memref<32x1xf32, #tpu.memory_space<vmem>>, vector<32x1xf32>
        %103 = arith.mulf %98, %102 : vector<32x1xf32>
        %cst_37 = arith.constant dense<0.000000e+00> : vector<32xf32>
        %104 = vector.multi_reduction <add>, %101, %cst_37 [1] : vector<32x128xf32> to vector<32xf32>
        %105 = vector.shape_cast %104 : vector<32xf32> to vector<32x1xf32>
        %106 = arith.addf %103, %105 : vector<32x1xf32>
        %c0_38 = arith.constant 0 : index
        %c0_39 = arith.constant 0 : index
        %107 = vector.load %arg9[%c0_38, %c0_39] : memref<32x1xf32, #tpu.memory_space<vmem>>, vector<32x1xf32>
        tpu.vector_store %arg9[%c0_38, %c0_39], %106 {strides = array<i32>} : memref<32x1xf32, #tpu.memory_space<vmem>>, vector<32x1xf32>,
        %108 = arith.truncf %101 : vector<32x128xf32> to vector<32x128xbf16>
        %109 = arith.truncf %61 : vector<32x128xf32> to vector<32x128xbf16>
        %cst_40 = arith.constant dense<0.000000e+00> : vector<32x32xf32>
        %110 = tpu.matmul %108, %109, %cst_40 {dimension_numbers = #tpu.dot_dimension_numbers<[1], [1], [0], [0], [0, 0, 1, 0], [], []>} : vector<32x128xbf16>, vector<32x128xbf16>, vector<32x32xf32> -> vector<32x32xf32>
        %c0_41 = arith.constant 0 : index
        %c0_42 = arith.constant 0 : index
        %111 = vector.load %arg10[%c0_41, %c0_42] : memref<32x32xf32, #tpu.memory_space<vmem>>, vector<32x32xf32>
        %112 = vector.broadcast %98 : vector<32x1xf32> to vector<32x32xf32>
        %113 = arith.mulf %112, %111 : vector<32x32xf32>
        %114 = arith.addf %113, %110 : vector<32x32xf32>
        %c0_43 = arith.constant 0 : index
        %c0_44 = arith.constant 0 : index
        %115 = vector.load %arg10[%c0_43, %c0_44] : memref<32x32xf32, #tpu.memory_space<vmem>>, vector<32x32xf32>
        tpu.vector_store %arg10[%c0_43, %c0_44], %114 {strides = array<i32>} : memref<32x32xf32, #tpu.memory_space<vmem>>, vector<32x32xf32>,
        %c0_45 = arith.constant 0 : index
        %c0_46 = arith.constant 0 : index
        %116 = vector.load %arg8[%c0_45, %c0_46] : memref<32x1xf32, #tpu.memory_space<vmem>>, vector<32x1xf32>
        tpu.vector_store %arg8[%c0_45, %c0_46], %95 {strides = array<i32>} : memref<32x1xf32, #tpu.memory_space<vmem>>, vector<32x1xf32>,
      } else {
      }
      %c3_i32_7 = arith.constant 3 : i32
      %15 = arith.cmpi eq, %arg2, %c3_i32_7 : i32
      %16 = arith.extui %15 : i1 to i32
      %c0_i32_8 = arith.constant 0 : i32
      %17 = arith.cmpi ne, %16, %c0_i32_8 : i32
      scf.if %17 {
        %c0 = arith.constant 0 : index
        %c0_9 = arith.constant 0 : index
        %18 = vector.load %arg9[%c0, %c0_9] : memref<32x1xf32, #tpu.memory_space<vmem>>, vector<32x1xf32>
        %cst = arith.constant 1.000000e+00 : f32
        %19 = vector.broadcast %cst : f32 to vector<32x1xf32>
        %20 = arith.divf %19, %18 : vector<32x1xf32>
        %c0_10 = arith.constant 0 : index
        %c0_11 = arith.constant 0 : index
        %21 = vector.load %arg10[%c0_10, %c0_11] : memref<32x32xf32, #tpu.memory_space<vmem>>, vector<32x32xf32>
        %22 = vector.broadcast %20 : vector<32x1xf32> to vector<32x32xf32>
        %23 = arith.mulf %22, %21 : vector<32x32xf32>
        %c0_12 = arith.constant 0 : index
        %c0_13 = arith.constant 0 : index
        %24 = vector.load %arg10[%c0_12, %c0_13] : memref<32x32xf32, #tpu.memory_space<vmem>>, vector<32x32xf32>
        tpu.vector_store %arg10[%c0_12, %c0_13], %23 {strides = array<i32>} : memref<32x32xf32, #tpu.memory_space<vmem>>, vector<32x32xf32>,
        %c0_14 = arith.constant 0 : index
        %c0_15 = arith.constant 0 : index
        %25 = vector.load %arg5[%c0_14, %c0_15] : memref<4x32xbf16, #tpu.memory_space<vmem>>, vector<4x32xbf16>
        %26 = arith.extf %25 : vector<4x32xbf16> to vector<4x32xf32>
        %c0_16 = arith.constant 0 : index
        %c0_17 = arith.constant 0 : index
        %27 = vector.load %arg6[%c0_16, %c0_17] : memref<4x3xf32, #tpu.memory_space<vmem>>, vector<4x1xf32>
        %c0_18 = arith.constant 0 : index
        %c1 = arith.constant 1 : index
        %28 = vector.load %arg6[%c0_18, %c1] : memref<4x3xf32, #tpu.memory_space<vmem>>, vector<4x1xf32>
        %c0_19 = arith.constant 0 : index
        %c2 = arith.constant 2 : index
        %29 = vector.load %arg6[%c0_19, %c2] : memref<4x3xf32, #tpu.memory_space<vmem>>, vector<4x1xf32>
        %c0_20 = arith.constant 0 : index
        %c0_21 = arith.constant 0 : index
        %30 = vector.load %arg11[%c0_20, %c0_21] : memref<32x1xf32, #tpu.memory_space<vmem>>, vector<32x1xf32>
        %cst_22 = arith.constant dense<0.000000e+00> : vector<32x1xf32>
        %31 = tpu.matmul %23, %30, %cst_22 {dimension_numbers = #tpu.dot_dimension_numbers<[0], [0], [1], [1], [0, 1, 1, 1], [], []>} : vector<32x32xf32>, vector<32x1xf32>, vector<32x1xf32> -> vector<32x1xf32>
        %c0_23 = arith.constant 0 : index
        %c0_24 = arith.constant 0 : index
        %32 = vector.load %arg12[%c0_23, %c0_24] : memref<32x32xf32, #tpu.memory_space<vmem>>, vector<32x32xf32>
        %cst_25 = arith.constant dense<0.000000e+00> : vector<32x32xf32>
        %33 = tpu.matmul %32, %23, %cst_25 {dimension_numbers = #tpu.dot_dimension_numbers<[1], [0], [0], [1], [0, 0, 1, 1], [], []>} : vector<32x32xf32>, vector<32x32xf32>, vector<32x32xf32> -> vector<32x32xf32>
        %cst_26 = arith.constant dense<0.000000e+00> : vector<32x32xf32>
        %34 = tpu.matmul %23, %33, %cst_26 {dimension_numbers = #tpu.dot_dimension_numbers<[0], [0], [1], [1], [0, 1, 1, 1], [], []>} : vector<32x32xf32>, vector<32x32xf32>, vector<32x32xf32> -> vector<32x32xf32>
        %cst_27 = arith.constant dense<0.000000e+00> : vector<4x1xf32>
        %35 = tpu.matmul %26, %31, %cst_27 {dimension_numbers = #tpu.dot_dimension_numbers<[1], [0], [0], [1], [0, 0, 1, 1], [], []>} : vector<4x32xf32>, vector<32x1xf32>, vector<4x1xf32> -> vector<4x1xf32>
        %cst_28 = arith.constant dense<0.000000e+00> : vector<4x32xf32>
        %36 = tpu.matmul %26, %34, %cst_28 {dimension_numbers = #tpu.dot_dimension_numbers<[1], [0], [0], [1], [0, 0, 1, 1], [], []>} : vector<4x32xf32>, vector<32x32xf32>, vector<4x32xf32> -> vector<4x32xf32>
        %37 = vector.shape_cast %35 : vector<4x1xf32> to vector<1x4x1xf32>
        %cst_29 = arith.constant dense<0.000000e+00> : vector<1xf32>
        %38 = vector.multi_reduction <add>, %37, %cst_29 [1, 2] : vector<1x4x1xf32> to vector<1xf32>
        %39 = vector.shape_cast %38 : vector<1xf32> to vector<1x1x1xf32>
        %40 = vector.extract %39[0, 0, 0] : f32 from vector<1x1x1xf32>
        %41 = vector.shape_cast %27 : vector<4x1xf32> to vector<1x4x1xf32>
        %cst_30 = arith.constant dense<0.000000e+00> : vector<1xf32>
        %42 = vector.multi_reduction <add>, %41, %cst_30 [1, 2] : vector<1x4x1xf32> to vector<1xf32>
        %43 = vector.shape_cast %42 : vector<1xf32> to vector<1x1x1xf32>
        %44 = vector.extract %43[0, 0, 0] : f32 from vector<1x1x1xf32>
        %cst_31 = arith.constant 4.320000e+02 : f32
        %45 = arith.mulf %cst_31, %44 : f32
        %46 = arith.addf %40, %45 : f32
        %47 = arith.mulf %36, %26 : vector<4x32xf32>
        %48 = vector.shape_cast %47 : vector<4x32xf32> to vector<1x4x32xf32>
        %cst_32 = arith.constant dense<0.000000e+00> : vector<1xf32>
        %49 = vector.multi_reduction <add>, %48, %cst_32 [1, 2] : vector<1x4x32xf32> to vector<1xf32>
        %50 = vector.shape_cast %49 : vector<1xf32> to vector<1x1x1xf32>
        %51 = vector.extract %50[0, 0, 0] : f32 from vector<1x1x1xf32>
        %52 = arith.mulf %27, %35 : vector<4x1xf32>
        %53 = vector.shape_cast %52 : vector<4x1xf32> to vector<1x4x1xf32>
        %cst_33 = arith.constant dense<0.000000e+00> : vector<1xf32>
        %54 = vector.multi_reduction <add>, %53, %cst_33 [1, 2] : vector<1x4x1xf32> to vector<1xf32>
        %55 = vector.shape_cast %54 : vector<1xf32> to vector<1x1x1xf32>
        %56 = vector.extract %55[0, 0, 0] : f32 from vector<1x1x1xf32>
        %cst_34 = arith.constant 2.000000e+00 : f32
        %57 = arith.mulf %cst_34, %56 : f32
        %58 = arith.addf %51, %57 : f32
        %59 = arith.mulf %27, %27 : vector<4x1xf32>
        %60 = vector.shape_cast %59 : vector<4x1xf32> to vector<1x4x1xf32>
        %cst_35 = arith.constant dense<0.000000e+00> : vector<1xf32>
        %61 = vector.multi_reduction <add>, %60, %cst_35 [1, 2] : vector<1x4x1xf32> to vector<1xf32>
        %62 = vector.shape_cast %61 : vector<1xf32> to vector<1x1x1xf32>
        %63 = vector.extract %62[0, 0, 0] : f32 from vector<1x1x1xf32>
        %cst_36 = arith.constant 4.320000e+02 : f32
        %64 = arith.mulf %cst_36, %63 : f32
        %65 = arith.addf %58, %64 : f32
        %cst_37 = arith.constant 4.000000e+00 : f32
        %cst_38 = arith.constant 4.320000e+02 : f32
        %66 = arith.mulf %cst_37, %cst_38 : f32
        %67 = arith.divf %46, %66 : f32
        %68 = arith.divf %65, %66 : f32
        %69 = arith.mulf %67, %67 : f32
        %70 = arith.subf %68, %69 : f32
        %cst_39 = arith.constant 0.000000e+00 : f32
        %71 = arith.maximumf %70, %cst_39 : f32
        %cst_40 = arith.constant 9.99999974E-6 : f32
        %72 = arith.addf %71, %cst_40 : f32
        %73 = math.rsqrt %72 : f32
        %74 = vector.broadcast %73 : f32 to vector<4x1xf32>
        %75 = arith.mulf %28, %74 : vector<4x1xf32>
        %c0_41 = arith.constant 0 : index
        %c0_42 = arith.constant 0 : index
        %76 = vector.load %arg14[%c0_41, %c0_42] : memref<4x1xf32, #tpu.memory_space<vmem>>, vector<4x1xf32>
        tpu.vector_store %arg14[%c0_41, %c0_42], %75 {strides = array<i32>} : memref<4x1xf32, #tpu.memory_space<vmem>>, vector<4x1xf32>,
        %77 = vector.broadcast %67 : f32 to vector<4x1xf32>
        %78 = arith.subf %27, %77 : vector<4x1xf32>
        %79 = arith.mulf %78, %75 : vector<4x1xf32>
        %80 = arith.addf %29, %79 : vector<4x1xf32>
        %c0_43 = arith.constant 0 : index
        %c0_44 = arith.constant 0 : index
        %81 = vector.load %arg15[%c0_43, %c0_44] : memref<4x1xf32, #tpu.memory_space<vmem>>, vector<4x1xf32>
        tpu.vector_store %arg15[%c0_43, %c0_44], %80 {strides = array<i32>} : memref<4x1xf32, #tpu.memory_space<vmem>>, vector<4x1xf32>,
      } else {
      }
    } else {
    }
    %c1_i32 = arith.constant 1 : i32
    %3 = arith.cmpi eq, %arg1, %c1_i32 : i32
    %4 = arith.extui %3 : i1 to i32
    %c0_i32_1 = arith.constant 0 : i32
    %5 = arith.cmpi ne, %4, %c0_i32_1 : i32
    scf.if %5 {
      %6 = arith.index_cast %arg2 : i32 to index
      %c0 = arith.constant 0 : index
      %c0_2 = arith.constant 0 : index
      %7 = vector.load %arg13[%6, %c0, %c0_2] : memref<4x32x128xbf16, #tpu.memory_space<vmem>>, vector<1x32x128xbf16>
      %8 = vector.shape_cast %7 : vector<1x32x128xbf16> to vector<32x128xbf16>
      %c0_3 = arith.constant 0 : index
      %c0_4 = arith.constant 0 : index
      %9 = vector.load %arg10[%c0_3, %c0_4] : memref<32x32xf32, #tpu.memory_space<vmem>>, vector<32x32xf32>
      %10 = arith.truncf %9 : vector<32x32xf32> to vector<32x32xbf16>
      %cst = arith.constant dense<0.000000e+00> : vector<32x128xf32>
      %11 = tpu.matmul %10, %8, %cst {dimension_numbers = #tpu.dot_dimension_numbers<[0], [0], [1], [1], [0, 1, 1, 1], [], []>} : vector<32x32xbf16>, vector<32x128xbf16>, vector<32x128xf32> -> vector<32x128xf32>
      %c0_5 = arith.constant 0 : index
      %c0_6 = arith.constant 0 : index
      %12 = vector.load %arg5[%c0_5, %c0_6] : memref<4x32xbf16, #tpu.memory_space<vmem>>, vector<4x32xbf16>
      %13 = arith.truncf %11 : vector<32x128xf32> to vector<32x128xbf16>
      %cst_7 = arith.constant dense<0.000000e+00> : vector<4x128xf32>
      %14 = tpu.matmul %12, %13, %cst_7 {dimension_numbers = #tpu.dot_dimension_numbers<[1], [0], [0], [1], [0, 0, 1, 1], [], []>} : vector<4x32xbf16>, vector<32x128xbf16>, vector<4x128xf32> -> vector<4x128xf32>
      %c0_8 = arith.constant 0 : index
      %c0_9 = arith.constant 0 : index
      %15 = vector.load %arg14[%c0_8, %c0_9] : memref<4x1xf32, #tpu.memory_space<vmem>>, vector<4x1xf32>
      %16 = vector.broadcast %15 : vector<4x1xf32> to vector<4x128xf32>
      %17 = arith.mulf %14, %16 : vector<4x128xf32>
      %c0_10 = arith.constant 0 : index
      %c0_11 = arith.constant 0 : index
      %18 = vector.load %arg15[%c0_10, %c0_11] : memref<4x1xf32, #tpu.memory_space<vmem>>, vector<4x1xf32>
      %19 = vector.broadcast %18 : vector<4x1xf32> to vector<4x128xf32>
      %20 = arith.addf %17, %19 : vector<4x128xf32>
      %c0_12 = arith.constant 0 : index
      %c0_13 = arith.constant 0 : index
      %c0_14 = arith.constant 0 : index
      %21 = vector.load %arg7[%c0_12, %c0_13, %c0_14] : memref<1x4x128xf32, #tpu.memory_space<vmem>>, vector<1x4x128xf32>
      %22 = vector.shape_cast %21 : vector<1x4x128xf32> to vector<4x128xf32>
      %23 = vector.shape_cast %20 : vector<4x128xf32> to vector<1x4x128xf32>
      tpu.vector_store %arg7[%c0_12, %c0_13, %c0_14], %23 {strides = array<i32>} : memref<1x4x128xf32, #tpu.memory_space<vmem>>, vector<1x4x128xf32>,
    } else {
    }
    return
  }
  func.func @transform_0(%arg0: i32, %arg1: i32, %arg2: i32) -> (i32, i32, i32) {
    %c1_i32 = arith.constant 1 : i32
    %0 = arith.subi %c1_i32, %arg1 : i32
    %1 = arith.muli %arg2, %0 : i32
    %c3_i32 = arith.constant 3 : i32
    %2 = arith.muli %c3_i32, %arg1 : i32
    %3 = arith.addi %1, %2 : i32
    %c0_i32 = arith.constant 0 : i32
    %c0_i32_0 = arith.constant 0 : i32
    return %arg0, %c0_i32, %3 : i32, i32, i32
  }
  func.func @transform_1(%arg0: i32, %arg1: i32, %arg2: i32) -> (i32, i32) {
    %c0_i32 = arith.constant 0 : i32
    %c0_i32_0 = arith.constant 0 : i32
    %c0_i32_1 = arith.constant 0 : i32
    return %c0_i32, %c0_i32_0 : i32, i32
  }
  func.func @transform_2(%arg0: i32, %arg1: i32, %arg2: i32) -> (i32, i32) {
    %c0_i32 = arith.constant 0 : i32
    %c0_i32_0 = arith.constant 0 : i32
    %c0_i32_1 = arith.constant 0 : i32
    return %c0_i32, %c0_i32_0 : i32, i32
  }
  func.func @transform_3(%arg0: i32, %arg1: i32, %arg2: i32) -> (i32, i32) {
    %c0_i32 = arith.constant 0 : i32
    %c0_i32_0 = arith.constant 0 : i32
    %c0_i32_1 = arith.constant 0 : i32
    return %c0_i32, %c0_i32_0 : i32, i32
  }
  func.func @transform_4(%arg0: i32, %arg1: i32, %arg2: i32) -> (i32, i32, i32) {
    %0 = arith.muli %arg2, %arg1 : i32
    %c0_i32 = arith.constant 0 : i32
    %c0_i32_0 = arith.constant 0 : i32
    return %arg0, %c0_i32, %0 : i32, i32, i32
  }
}

</mosaic_0001>

<bundles_post_ra>
// kernel: tpu_custom_call.1
= control target key start
LH: loop header
LB: loop body
LE: loop exit
PB: predicated region body
PF: predicated region fallthrough
CT: control target
= control target key end

     0   :  { %s4066_s0 = inlined_call_operand.vmem [shape: f32[2,4,432], index: 0, kind: input, shape index: {}]   ;;  %s4067_s1 = inlined_call_operand.vmem [shape: bf16[96,4], index: 1, kind: input, shape index: {}]   ;;  %s4068_s2 = inlined_call_operand.vmem [shape: bf16[4,32], index: 2, kind: input, shape index: {}]   ;;  %s4069_s3 = inlined_call_operand.vmem [shape: f32[4,3], index: 3, kind: input, shape index: {}]   ;;  %s4070_s4 = inlined_call_operand.hbm [shape: f32[2,4,432], index: 4, kind: output, shape index: {}]  }
   0x1   :  { %4078 = sst [smem:[#allocation19_spill]] %s4066_s0 }
   0x2   :  { %4079 = sst [smem:[#allocation20_spill]] %s4067_s1 }
   0x3   :  { %4080 = sst [smem:[#allocation21_spill]] %s4069_s3 }
   0x4   :  { %9 = vsyncpa [#allocation11], 0 }
   0x5   :  { %11 = vsyncpa [#allocation11 + $0x1], 0  ;;  %s3393_s15 = smov 0   ;;  %s3395_s16 = smov 0  }
   0x6   :  { %s3397_s17 = smov 0   ;;  %s3399_s18 = smov 0  }
   0x7   :  { %s3401_s19 = smov 0   ;;  %s3403_s20 = smov 0  }
   0x8   :  { %s3405_s21 = smov 0   ;;  %s3407_s22 = smov 0  }
   0x9   :  { %s3409_s23 = smov 0   ;;  %s3411_s24 = smov 0  }
   0xa LB: > { %4081 = sst [smem:[#allocation13_spill]] %s3333_s21  ;;  %s2440_s25 = sadd.s32 4294967295, %s3345_s24   ;;  %s3345_s24 = sphi %s3411_s24, %s17_s24   ;;  %s3341_s23 = sphi %s3409_s23, %s4103_s23   ;;  %s3337_s22 = sphi %s3407_s22, %s4102_s22   ;;  %s3333_s21 = sphi %s3405_s21, %s4101_s21   ;;  %s3329_s20 = sphi %s3403_s20, %s4100_s20   ;;  %s3325_s19 = sphi %s3401_s19, %s4099_s19   ;;  %s3321_s18 = sphi %s3399_s18, %s4098_s18   ;;  %s3317_s17 = sphi %s3397_s17, %s4106_s17   ;;  %s3313_s16 = sphi %s3395_s16, %s4105_s16   ;;  %s3309_s15 = sphi %s3393_s15, %s4104_s15  }
   0xb   : > { %4082 = sst [smem:[#allocation14_spill]] %s3337_s22  ;;  %s2441_s26 = sadd.s32 4294967294, %s3345_s24  }
   0xc   : > { %4083 = sst [smem:[#allocation15_spill]] %s3341_s23  ;;  %s29_s27 = sadd.s32 1, %s3333_s21 }
   0xd   : > { %p30_p0 = scmp.ge.s32.totalorder %s29_s27, 4  ;;  %s32_s28 = sadd.s32 1, %s3337_s22 }
   0xe   : > { %s36_s29 = sadd.s32 1, %s3341_s23  ;;  %s139_s30 = smul.u32 %s3333_s21, %s3337_s22 }
   0xf   : > { %s4108_s27 = smov (%p30_p0, %s29_s27), 0  ;;  %s4110_s28 = smov (!%p30_p0, %s32_s28), %s3337_s22 }
  0x10   : > { %4084 = sst [smem:[#allocation16_spill]] %s4108_s27  ;;  %p156_p1 = scmp.ne.s32.totalorder %s3317_s17, %s3313_s16 }
  0x11   : > { %p157_p2 = scmp.eq.s32.totalorder %s2440_s25, 15  ;;  %p34_p3 = scmp.ge.s32.totalorder %s4110_s28, 2 }
  0x12   : > { %p162_p4 = scmp.ne.s32.totalorder %s3313_s16, %s3309_s15  ;;  %p163_p6 = scmp.eq.s32.totalorder %s2441_s26, 15 }
  0x13   : > { %p3457_p5 = por %p157_p2, %p156_p1  ;;  %s4112_s28 = smov (%p34_p3, %s4110_s28), 0 }
  0x14   : > { %4086 = sst [smem:[#allocation17_spill]] %s4112_s28  ;;  %s4114_s29 = smov (!%p34_p3, %s36_s29), %s3341_s23 }
  0x15   : > { %s140_s6 = smul.u32 %s4112_s28, %s4108_s27  ;;  %p3466_p7 = por %p163_p6, %p162_p4 }
  0x16   : > { %p38_p8 = scmp.ge.s32.totalorder %s4114_s29, 2  ;;  %p2444_p9 = scmp.ge.s32.totalorder %s3345_s24, 1 }
  0x17   : > { %s142_s8 = ssub.s32 %s139_s30, %s140_s6  ;;  %p209_p10 = scmp.lt.s32.totalorder %s3345_s24, 17 }
  0x18   : > { %s4116_s29 = smov (%p38_p8, %s4114_s29), 0  ;;  %s146_s11 = sadd.s32 1, %s3317_s17 }
  0x19   : > { %4088 = sst [smem:[#allocation18_spill]] %s4116_s29  ;;  %p210_p11 = pnand %p2444_p9, %p209_p10 }
  0x1a   : > { %s141_s9 = ssub.s32 %s3341_s23, %s4116_s29  ;;  %s4075_s13 = sand.u32 (!%p210_p11), 1, %s3313_s16  }
  0x1b   : > { %s143_s10 = sor.u32 %s142_s8, %s141_s9  ;;  %213 = sbr.rel (%p210_p11) target bundleno = 3368 (0xd28), region = 36 }
  0x1c   : > { %p144_p12 = scmp.eq.s32.totalorder %s143_s10, 0  ;;  %s242_s14 = ssub.s32 (!%p210_p11), 1, %s3325_s19 }
  0x1d   : > { %s3484_s25 = sshll.u32 (!%p210_p11), %s4075_s13, 2  ;;  %s243_s26 = smul.u32 (!%p210_p11), %s3321_s18, %s242_s14 }
  0x1e   : > { %s3478_s12 = scalar_select %p144_p12, %s3317_s17, %s146_s11  }
  0x1f   : > { %s244_s30 = smul.u32 (!%p210_p11), 3, %s3325_s19  ;;  %p246_p13 = scmp.lt.s32.totalorder (!%p210_p11), %s3329_s20, 1 }
  0x20   : > { %s4089_s0 = sld [smem:[#allocation19_spill]] (!%p210_p11)  ;;  %p2448_p1 = scmp.ne.s32.totalorder (!%p210_p11), %s3325_s19, 0 }
  0x21   : > { %s245_s6 = sadd.s32 (!%p210_p11), %s244_s30, %s243_s26 }
  0x22   : > { %s247_s8 = scalar_select %p246_p13, %s3329_s20, 1 }
  0x23   : > { %p248_p0 = scmp.lt.s32.totalorder %s245_s6, 3  ;;  %263 = sbr.rel (%p2448_p1) target bundleno = 2789 (0xae5), region = 40 }
  0x24   : > { %s2446_s9 = sshll.u32 %s247_s8, 2  ;;  %p2449_p2 = scmp.ne.s32.totalorder (!%p2448_p1), %s3321_s18, 0 }
  0x25   : > { %s4118_s6 = smov (!%p248_p0, %s245_s6), 3 }
  0x26   : > { %s251_s10 = sadd.s32 %s2446_s9, %s4118_s6 }
  0x27   : > { %s2447_s11 = sshll.u32 %s251_s10, 2 }
  0x28   : > { %s3493_s27 = scalar_lea.vmem %s4089_s0, %s2447_s11 }
  0x2a   : > { %267 = sbr.rel (%p2449_p2) target bundleno = 53 (0x35), region = 44  ;;  %vm268_vm0 = vcmask (!%p2449_p2), 7168   ;;  %vm277_vm1 = vcmask (!%p2449_p2), 261120   ;;  %v3347_v0 = vmov (!%p2449_p2), -inf   ;;  %v3348_v1 = vmov (!%p2449_p2), 0.0  }
  0x2b   : > { %269 = vst.msk [vmem:[#allocation2] sm:$0xff] (!%p2449_p2), %vm268_vm0, %v3347_v0  ;;  %270 = vst.msk [vmem:[#allocation2 + $0x8] sm:$0xff] (!%p2449_p2), %vm268_vm0, %v3347_v0 }
  0x2c   : > { %271 = vst.msk [vmem:[#allocation2 + $0x10] sm:$0xff] (!%p2449_p2), %vm268_vm0, %v3347_v0  ;;  %272 = vst.msk [vmem:[#allocation2 + $0x18] sm:$0xff] (!%p2449_p2), %vm268_vm0, %v3347_v0 }
  0x2d   : > { %273 = vst.msk [vmem:[#allocation3] sm:$0xff] (!%p2449_p2), %vm268_vm0, %v3348_v1  ;;  %274 = vst.msk [vmem:[#allocation3 + $0x8] sm:$0xff] (!%p2449_p2), %vm268_vm0, %v3348_v1 }
  0x2e   : > { %275 = vst.msk [vmem:[#allocation3 + $0x10] sm:$0xff] (!%p2449_p2), %vm268_vm0, %v3348_v1  ;;  %276 = vst.msk [vmem:[#allocation3 + $0x18] sm:$0xff] (!%p2449_p2), %vm268_vm0, %v3348_v1 }
  0x2f   : > { %282 = vst.msk [vmem:[#allocation5] sm:$0xff] (!%p2449_p2), %vm268_vm0, %v3348_v1  ;;  %283 = vst.msk [vmem:[#allocation5 + $0x8] sm:$0xff] (!%p2449_p2), %vm268_vm0, %v3348_v1 }
  0x30   : > { %284 = vst.msk [vmem:[#allocation5 + $0x10] sm:$0xff] (!%p2449_p2), %vm268_vm0, %v3348_v1  ;;  %285 = vst.msk [vmem:[#allocation5 + $0x18] sm:$0xff] (!%p2449_p2), %vm268_vm0, %v3348_v1 }
  0x31   : > { %278 = vst.msk [vmem:[#allocation4] sm:$0xff] %vm277_vm1, %v3348_v1  ;;  %279 = vst.msk [vmem:[#allocation4 + $0x8] sm:$0xff] %vm277_vm1, %v3348_v1 }
  0x32   : > { %280 = vst.msk [vmem:[#allocation4 + $0x10] sm:$0xff] %vm277_vm1, %v3348_v1  ;;  %281 = vst.msk [vmem:[#allocation4 + $0x18] sm:$0xff] %vm277_vm1, %v3348_v1 }
  0x33   : > { %286 = vst.msk [vmem:[#allocation6] sm:$0xff] %vm277_vm1, %v3348_v1  ;;  %287 = vst.msk [vmem:[#allocation6 + $0x8] sm:$0xff] %vm277_vm1, %v3348_v1 }
  0x34   : > { %288 = vst.msk [vmem:[#allocation6 + $0x10] sm:$0xff] %vm277_vm1, %v3348_v1  ;;  %289 = vst.msk [vmem:[#allocation6 + $0x18] sm:$0xff] %vm277_vm1, %v3348_v1 }
  0x35 PF: > { %p2450_p3 = scmp.eq.s32.totalorder %s3321_s18, 3 }
  0x36   : > { %s4090_s1 = sld [smem:[#allocation20_spill]] (!%p2450_p3)  ;;  %v3349_v4 = vmov (!%p2450_p3), 0   ;;  %v3350_v11 = vmov (!%p2450_p3), 1   ;;  %v3351_v12 = vmov (!%p2450_p3), 2   ;;  %v3352_v14 = vmov (!%p2450_p3), 3   ;;  %s2500_s14 = sshll.u32 (!%p2450_p3), %s3321_s18, 4 }
  0x37   : > { %293 = sbr.rel (%p2450_p3) target bundleno = 735 (0x2df), region = 48  ;;  %2897 = vset.pattern.permute.xlu1 (!%p2450_p3), %v3349_v4  ;;  %2885 = vset.pattern.permute.xlu0 (!%p2450_p3), %v3349_v4  ;;  %v379_v18 = vlaneseq (!%p2450_p3)  ;;  %v294_v26 = vld [vmem:[%s3493_s27] sm:$0xf] (!%p2450_p3)  ;;  %vm682_vm2 = vcmask (!%p2450_p3), 7168   ;;  %s663_s26 = scalar_lea.vmem (!%p2450_p3), [#allocation7], %s2500_s14  ;;  %vm744_vm3 = vcmask (!%p2450_p3), 261120  }
  0x39   : > { %v380_v21 = vshrl.u32 (!%p2450_p3), %v379_v18, 7 }
  0x3b   : > { %v445_v22 = vsub.s32 (!%p2450_p3), 1, %v380_v21  ;;  %v381_v25 = vsub.s32 (!%p2450_p3), 0, %v380_v21  ;;  %v521_v27 = vsub.s32 (!%p2450_p3), 2, %v380_v21  ;;  %v597_v37 = vsub.s32 (!%p2450_p3), 3, %v380_v21 }
  0x3c   : > { %v2553_v2 = vld [vmem:[%s4090_s1 + $0x18] sm:$0xff] (!%p2450_p3)   ;;  %v2552_v3 = vld [vmem:[%s4090_s1 + $0x10] sm:$0xff] (!%p2450_p3)   ;;  %v2504_v13 = vld [vmem:[%s4090_s1] sm:$0xff] (!%p2450_p3)  }
  0x3d   : > { %v2517_v5 = vunpack.c.l.bf16 (!%p2450_p3), %v2553_v2  ;;  %v2518_v6 = vunpack.c.h.bf16 (!%p2450_p3), %v2553_v2  ;;  %v2513_v7 = vunpack.c.l.bf16 (!%p2450_p3), %v2552_v3  ;;  %v2514_v8 = vunpack.c.h.bf16 (!%p2450_p3), %v2552_v3 }
  0x3e   : > { %v2505_v15 = vunpack.c.l.bf16 %v2504_v13  ;;  %v2506_v16 = vunpack.c.h.bf16 %v2504_v13  ;;  %v3530_v28 = vrot.slane %v294_v26, %v445_v22  ;;  %v3532_v33 = vrot.slane %v294_v26, %v381_v25  ;;  %v2551_v22 = vld [vmem:[%s4090_s1 + $0x8] sm:$0xff]  }
  0x3f   : > { %v2898_v9 = vpack.i.bf16 %v2518_v6, %v2517_v5  ;;  %v2886_v10 = vpack.i.bf16 %v2514_v8, %v2513_v7  ;;  %v3534_v35 = vrot.slane %v294_v26, %v521_v27  ;;  %v3542_v49 = vrot.slane %v294_v26, %v597_v37  ;;  %v2554_v26 = vld [vmem:[%s4090_s1 + $0x20] sm:$0xff]   ;;  %v3587_v37 = vld [vmem:[#allocation2 + $0x8] sm:$0xff] }
  0x40   : > { %v3524_v17 = vpack.i.bf16 %v2506_v16, %v2505_v15  ;;  %v2521_v27 = vunpack.c.l.bf16 %v2554_v26 }
  0x41   : > { %2899 = vperm.xlu1 %2897, %v2898_v9   ;;  %2887 = vperm.xlu0 %2885, %v2886_v10  }
  0x45   : > { %2903 = vset.pattern.permute.xlu1 %v3350_v11  ;;  %2891 = vset.pattern.permute.xlu0 %v3350_v11 }
  0x46   : > { %2905 = vperm.xlu1 %2903, %v2898_v9   ;;  %2893 = vperm.xlu0 %2891, %v2886_v10  }
  0x4a   : > { %2909 = vset.pattern.permute.xlu1 %v3351_v12  ;;  %2915 = vset.pattern.permute.xlu0 %v3351_v12 }
  0x4b   : > { %2911 = vperm.xlu1 %2909, %v2886_v10   ;;  %2917 = vperm.xlu0 %2915, %v2898_v9  }
  0x4f   : > { %2921 = vset.pattern.permute.xlu1 %v3352_v14  ;;  %2938 = vset.pattern.permute.xlu0 %v3349_v4 }
  0x50   : > { %2923 = vperm.xlu1 %2921, %v2886_v10  }
  0x54   : > { %2928 = vperm.xlu1 %2921, %v2898_v9  }
  0x58   : > { %2932 = vset.pattern.permute.xlu1 %v3349_v4 }
  0x59   : > { %2934 = vperm.xlu1 %2932, %v3524_v17  }
  0x5d   : > { %2944 = vset.pattern.permute.xlu1 %v3350_v11 }
  0xc0   : > { %v2900_v19 = vpop.permute.xlu1 %2899  ;;  %v2888_v20 = vpop.permute.xlu0 %2887 }
  0xc1   : > { %v2890_v29 = vunpack.i.h.bf16 %v2888_v20  ;;  %v2889_v30 = vunpack.i.l.bf16 %v2888_v20  ;;  %v2901_v45 = vunpack.i.l.bf16 %v2900_v19  ;;  %v2902_v57 = vunpack.i.h.bf16 %v2900_v19 }
  0xc3   : > { %v387_v41 = vmul.f32 %v2889_v30, %v3532_v33  ;;  %v388_v42 = vmul.f32 %v2890_v29, %v3532_v33  ;;  %v389_v58 = vmul.f32 %v2901_v45, %v3532_v33  ;;  %v390_v9 = vmul.f32 %v2902_v57, %v3532_v33  ;;  %v2555_v30 = vld [vmem:[%s4090_s1 + $0x28] sm:$0xff]  }
  0xc4   : > { %v2522_v29 = vunpack.c.h.bf16 %v2554_v26 }
  0xc5   : > { %v2906_v23 = vpop.permute.xlu1 %2905  ;;  %v2894_v24 = vpop.permute.xlu0 %2893 }
  0xc6   : > { %v2896_v31 = vunpack.i.h.bf16 %v2894_v24  ;;  %v2895_v32 = vunpack.i.l.bf16 %v2894_v24  ;;  %v2907_v38 = vunpack.i.l.bf16 %v2906_v23  ;;  %v2908_v50 = vunpack.i.h.bf16 %v2906_v23 }
  0xc7   : > { %v2509_v23 = vunpack.c.l.bf16 %v2551_v22  ;;  %v2510_v24 = vunpack.c.h.bf16 %v2551_v22 }
  0xc8   : > { %v451_v43 = vmul.f32 %v2895_v32, %v3530_v28  ;;  %v452_v44 = vmul.f32 %v2896_v31, %v3530_v28  ;;  %v453_v51 = vmul.f32 %v2907_v38, %v3530_v28  ;;  %v454_v1 = vmul.f32 %v2908_v50, %v3530_v28  ;;  %v3589_v38 = vld [vmem:[#allocation2] sm:$0xff] }
  0xc9   : > { %v2950_v25 = vpack.i.bf16 %v2510_v24, %v2509_v23  ;;  %v2990_v31 = vpack.i.bf16 %v2522_v29, %v2521_v27  ;;  %v2525_v32 = vunpack.c.l.bf16 %v2555_v30 }
  0xca   : > { %v2912_v34 = vpop.permute.xlu1 %2911  ;;  %v2918_v36 = vpop.permute.xlu0 %2917  ;;  %v464_v55 = vadd.f32 %v452_v44, %v388_v42  ;;  %v463_v56 = vadd.f32 %v451_v43, %v387_v41  ;;  %v465_v3 = vadd.f32 %v453_v51, %v389_v58  ;;  %v466_v18 = vadd.f32 %v454_v1, %v390_v9  ;;  %v3606_v44 = vld [vmem:[#allocation2 + $0x10] sm:$0xff] }
  0xcb   : > { %v2914_v39 = vunpack.i.h.bf16 %v2912_v34  ;;  %v2913_v40 = vunpack.i.l.bf16 %v2912_v34  ;;  %v2919_v46 = vunpack.i.l.bf16 %v2918_v36  ;;  %v2920_v59 = vunpack.i.h.bf16 %v2918_v36 }
  0xcc   : > { %v2526_v34 = vunpack.c.h.bf16 %v2555_v30 }
  0xcd   : > { %v527_v47 = vmul.f32 %v2913_v40, %v3534_v35  ;;  %v528_v48 = vmul.f32 %v2914_v39, %v3534_v35  ;;  %v529_v60 = vmul.f32 %v2919_v46, %v3534_v35  ;;  %v530_v10 = vmul.f32 %v2920_v59, %v3534_v35 }
  0xce   : > { %v3008_v36 = vpack.i.bf16 %v2526_v34, %v2525_v32 }
  0xcf   : > { %v2924_v52 = vpop.permute.xlu1 %2923  ;;  %v540_v61 = vadd.f32 %v528_v48, %v464_v55  ;;  %v539_v63 = vadd.f32 %v527_v47, %v463_v56  ;;  %v541_v13 = vadd.f32 %v529_v60, %v465_v3  ;;  %v542_v20 = vadd.f32 %v530_v10, %v466_v18  ;;  %v3612_v48 = vld [vmem:[#allocation2 + $0x18] sm:$0xff] }
  0xd0   : > { %v2926_v53 = vunpack.i.h.bf16 %v2924_v52  ;;  %v2925_v54 = vunpack.i.l.bf16 %v2924_v52 }
  0xd2   : > { %v604_v62 = vmul.f32 %v2926_v53, %v3542_v49  ;;  %v603_v0 = vmul.f32 %v2925_v54, %v3542_v49 }
  0xd3   : > { %v2929_v2 = vpop.permute.xlu1 %2928 }
  0xd4   : > { %v2931_v5 = vunpack.i.h.bf16 %v2929_v2  ;;  %v2930_v6 = vunpack.i.l.bf16 %v2929_v2  ;;  %v3550_v7 = vadd.f32 %v604_v62, %v540_v61  ;;  %v3552_v8 = vadd.f32 %v603_v0, %v539_v63 }
  0xd6   : > { %755 = vmax.xlane.f32.xlu1 %v3550_v7  ;;  %753 = vmax.xlane.f32.xlu0 %v3552_v8  ;;  %v605_v15 = vmul.f32 %v2930_v6, %v3542_v49  ;;  %v606_v19 = vmul.f32 %v2931_v5, %v3542_v49 }
  0xd8   : > { %v3559_v16 = vadd.f32 %v605_v15, %v541_v13  ;;  %v3563_v21 = vadd.f32 %v606_v19, %v542_v20 }
  0xda   : > { %757 = vmax.xlane.f32.xlu0 %v3559_v16 }
  0xde   : > { %759 = vmax.xlane.f32.xlu0 %v3563_v21 }
  0xe7   : > { %2946 = vperm.xlu1 %2944, %v3524_v17  }
  0xeb   : > { %2951 = vperm.xlu1 %2944, %v2950_v25  }
  0xef   : > { %2955 = vset.pattern.permute.xlu1 %v3351_v12 }
  0xf0   : > { %2957 = vperm.xlu1 %2955, %v3524_v17  }
  0xf4   : > { %2962 = vperm.xlu1 %2955, %v2950_v25   ;;  %2940 = vperm.xlu0 %2938, %v2950_v25  }
  0xf8   : > { %2966 = vset.pattern.permute.xlu1 %v3352_v14  ;;  %2989 = vset.pattern.permute.xlu0 %v3351_v12 }
  0xf9   : > { %2968 = vperm.xlu1 %2966, %v3524_v17   ;;  %2991 = vperm.xlu0 %2989, %v2990_v31   ;;  %v2935_v17 = vpop.permute.xlu1 %2934 }
  0xfa   : > { %v2937_v60 = vunpack.i.h.bf16 %v2935_v17  ;;  %v2936_v61 = vunpack.i.l.bf16 %v2935_v17 }
  0xfc   : > { %v384_v15 = vmul.f32 %v2937_v60, %v3532_v33 }
  0xfd   : > { %2973 = vperm.xlu1 %2966, %v2950_v25   ;;  %3007 = vset.pattern.permute.xlu0 %v3350_v11 }
  0xfe   : > { %3009 = vperm.xlu0 %3007, %v3008_v36  }
 0x101   : > { %2977 = vset.pattern.permute.xlu1 %v3349_v4 }
 0x102   : > { %2979 = vperm.xlu1 %2977, %v2990_v31   ;;  %3013 = vset.pattern.permute.xlu0 %v3349_v4 }
 0x106   : > { %2983 = vset.pattern.permute.xlu1 %v3350_v11 }
 0x107   : > { %2985 = vperm.xlu1 %2983, %v2990_v31  }
 0x10b   : > { %2995 = vset.pattern.permute.xlu1 %v3352_v14 }
 0x10c   : > { %2997 = vperm.xlu1 %2995, %v2990_v31  }
 0x110   : > { %3001 = vset.pattern.permute.xlu1 %v3349_v4 }
 0x111   : > { %3003 = vperm.xlu1 %3001, %v3008_v36  }
 0x163   : > { %v756_v39 = vpop.xlane.xlu1 %755  ;;  %v754_v40 = vpop.xlane.xlu0 %753 }
 0x164   : > { %v3592_v41 = vmax.f32 %v3587_v37, %v756_v39  ;;  %v3595_v11 = vmax.f32 %v3589_v38, %v754_v40 }
 0x166   : > { %v766_v42 = vsub.f32 %v3587_v37, %v3592_v41  ;;  %923 = vst.msk [vmem:[#allocation2 + $0x8] sm:$0xff] %vm682_vm2, %v3592_v41  ;;  %v765_v43 = vsub.f32 %v3589_v38, %v3595_v11  ;;  %922 = vst.msk [vmem:[#allocation2] sm:$0xff] %vm682_vm2, %v3595_v11  ;;  %779 = vperm.xlu1 %3001, %v3595_v11   ;;  %v667_v37 = vld [vmem:[#allocation5 + $0x8] sm:$0xff] }
 0x167   : > { %v2947_v45 = vpop.permute.xlu1 %2946  ;;  %v758_v46 = vpop.xlane.xlu0 %757 }
 0x168   : > { %v3609_v47 = vmax.f32 %v3606_v44, %v758_v46  ;;  %v2949_v58 = vunpack.i.h.bf16 %v2947_v45  ;;  %v2948_v59 = vunpack.i.l.bf16 %v2947_v45 }
 0x16a   : > { %784 = vperm.xlu1 %3001, %v3592_v41   ;;  %v767_v50 = vsub.f32 %v3606_v44, %v3609_v47  ;;  %924 = vst.msk [vmem:[#allocation2 + $0x10] sm:$0xff] %vm682_vm2, %v3609_v47  ;;  %789 = vperm.xlu0 %3013, %v3609_v47   ;;  %v448_v10 = vmul.f32 %v2949_v58, %v3530_v28  ;;  %v666_v41 = vld [vmem:[#allocation5] sm:$0xff] }
 0x16b   : > { %v2952_v51 = vpop.permute.xlu1 %2951  ;;  %v760_v52 = vpop.xlane.xlu0 %759  ;;  %v447_v13 = vmul.f32 %v2948_v59, %v3530_v28 }
 0x16c   : > { %v3620_v53 = vmax.f32 %v3612_v48, %v760_v52  ;;  %v2954_v56 = vunpack.i.h.bf16 %v2952_v51  ;;  %v2953_v57 = vunpack.i.l.bf16 %v2952_v51  ;;  %v460_v32 = vadd.f32 %v448_v10, %v384_v15 }
 0x16e   : > { %v768_v54 = vsub.f32 %v3612_v48, %v3620_v53  ;;  %925 = vst.msk [vmem:[#allocation2 + $0x18] sm:$0xff] %vm682_vm2, %v3620_v53  ;;  %794 = vperm.xlu1 %3001, %v3620_v53   ;;  %3020 = vset.pattern.permute.xlu0 %v3352_v14  ;;  %v450_v14 = vmul.f32 %v2954_v56, %v3530_v28 }
 0x16f   : > { %v2958_v55 = vpop.permute.xlu1 %2957  ;;  %3022 = vperm.xlu0 %3020, %v3008_v36   ;;  %v449_v5 = vmul.f32 %v2953_v57, %v3530_v28 }
 0x170   : > { %v2960_v0 = vunpack.i.h.bf16 %v2958_v55  ;;  %v2959_v1 = vunpack.i.l.bf16 %v2958_v55 }
 0x172   : > { %3014 = vset.pattern.permute.xlu1 %v3351_v12  ;;  %v383_v12 = vmul.f32 %v2936_v61, %v3532_v33  ;;  %v524_v20 = vmul.f32 %v2960_v0, %v3534_v35  ;;  %v523_v22 = vmul.f32 %v2959_v1, %v3534_v35 }
 0x173   : > { %v2963_v62 = vpop.permute.xlu1 %2962  ;;  %v2941_v63 = vpop.permute.xlu0 %2940  ;;  %3016 = vperm.xlu1 %3014, %v3008_v36   ;;  %3027 = vset.pattern.permute.xlu0 %v3349_v4 }
 0x174   : > { %v2965_v2 = vunpack.i.h.bf16 %v2963_v62  ;;  %v2964_v3 = vunpack.i.l.bf16 %v2963_v62  ;;  %v2943_v6 = vunpack.i.h.bf16 %v2941_v63  ;;  %v2942_v9 = vunpack.i.l.bf16 %v2941_v63 }
 0x175   : > { %v459_v31 = vadd.f32 %v447_v13, %v383_v12  ;;  %v536_v39 = vadd.f32 %v524_v20, %v460_v32 }
 0x176   : > { %v386_v18 = vmul.f32 %v2943_v6, %v3532_v33  ;;  %v385_v19 = vmul.f32 %v2942_v9, %v3532_v33  ;;  %v526_v23 = vmul.f32 %v2965_v2, %v3534_v35  ;;  %v525_v24 = vmul.f32 %v2964_v3, %v3534_v35 }
 0x177   : > { %3026 = vset.pattern.permute.xlu1 %v3349_v4  ;;  %v535_v17 = vadd.f32 %v523_v22, %v459_v31 }
 0x178   : > { %v2969_v25 = vpop.permute.xlu1 %2968  ;;  %v462_v29 = vadd.f32 %v450_v14, %v386_v18  ;;  %v461_v30 = vadd.f32 %v449_v5, %v385_v19  ;;  %v2992_v61 = vpop.permute.xlu0 %2991 }
 0x179   : > { %v2971_v26 = vunpack.i.h.bf16 %v2969_v25  ;;  %v2970_v27 = vunpack.i.l.bf16 %v2969_v25  ;;  %v2994_v2 = vunpack.i.h.bf16 %v2992_v61  ;;  %v2993_v14 = vunpack.i.l.bf16 %v2992_v61 }
 0x17a   : > { %v537_v51 = vadd.f32 %v525_v24, %v461_v30  ;;  %v538_v52 = vadd.f32 %v526_v23, %v462_v29 }
 0x17b   : > { %v600_v34 = vmul.f32 %v2971_v26, %v3542_v49  ;;  %v599_v36 = vmul.f32 %v2970_v27, %v3542_v49  ;;  %v532_v15 = vmul.f32 %v2994_v2, %v3534_v35  ;;  %v531_v22 = vmul.f32 %v2993_v14, %v3534_v35 }
 0x17c   : > { %v2974_v40 = vpop.permute.xlu1 %2973 }
 0x17d   : > { %v2976_v45 = vunpack.i.h.bf16 %v2974_v40  ;;  %v2975_v46 = vunpack.i.l.bf16 %v2974_v40  ;;  %v611_v55 = vadd.f32 %v599_v36, %v535_v17  ;;  %v612_v56 = vadd.f32 %v600_v34, %v536_v39 }
 0x17f   : > { %v602_v4 = vmul.f32 %v2976_v45, %v3542_v49  ;;  %v601_v57 = vmul.f32 %v2975_v46, %v3542_v49  ;;  %v623_v63 = vmax.f32 %v611_v55, %v612_v56 }
 0x181   : > { %v613_v58 = vadd.f32 %v601_v57, %v537_v51  ;;  %v614_v59 = vadd.f32 %v602_v4, %v538_v52  ;;  %v2980_v60 = vpop.permute.xlu1 %2979 }
 0x182   : > { %v2982_v62 = vunpack.i.h.bf16 %v2980_v60  ;;  %v2981_v1 = vunpack.i.l.bf16 %v2980_v60 }
 0x183   : > { %v624_v0 = vmax.f32 %v613_v58, %v614_v59 }
 0x184   : > { %v392_v5 = vmul.f32 %v2982_v62, %v3532_v33  ;;  %v391_v10 = vmul.f32 %v2981_v1, %v3532_v33 }
 0x185   : > { %v625_v3 = vmax.f32 %v623_v63, %v624_v0 }
 0x186   : > { %v2986_v6 = vpop.permute.xlu1 %2985 }
 0x187   : > { %v626_v9 = vrot.slane %v625_v3, 4  ;;  %v2988_v13 = vunpack.i.h.bf16 %v2986_v6  ;;  %v2987_v12 = vunpack.i.l.bf16 %v2986_v6 }
 0x189   : > { %v627_v18 = vmax.f32 %v625_v3, %v626_v9  ;;  %v456_v19 = vmul.f32 %v2988_v13, %v3530_v28  ;;  %v455_v20 = vmul.f32 %v2987_v12, %v3530_v28 }
 0x18b   : > { %v628_v23 = vrot.slane %v627_v18, 2  ;;  %v467_v24 = vadd.f32 %v455_v20, %v391_v10  ;;  %v468_v25 = vadd.f32 %v456_v19, %v392_v5  ;;  %v2998_v26 = vpop.permute.xlu1 %2997 }
 0x18c   : > { %v3000_v27 = vunpack.i.h.bf16 %v2998_v26  ;;  %v2999_v29 = vunpack.i.l.bf16 %v2998_v26 }
 0x18d   : > { %v629_v30 = vmax.f32 %v627_v18, %v628_v23  ;;  %v543_v31 = vadd.f32 %v531_v22, %v467_v24  ;;  %v544_v32 = vadd.f32 %v532_v15, %v468_v25  ;;  %v769_v24 = vmul.f32 1.442695, %v765_v43 }
 0x18e   : > { %v608_v34 = vmul.f32 %v3000_v27, %v3542_v49  ;;  %v607_v36 = vmul.f32 %v2999_v29, %v3542_v49 }
 0x18f   : > { %v630_v17 = vrot.slane %v629_v30, 1 }
 0x190   : > { %v619_v39 = vadd.f32 %v607_v36, %v543_v31  ;;  %v620_v40 = vadd.f32 %v608_v34, %v544_v32  ;;  %v3004_v26 = vpop.permute.xlu1 %3003 }
 0x191   : > { %v631_v45 = vmax.f32 %v629_v30, %v630_v17  ;;  %v3010_v30 = vpop.permute.xlu0 %3009  ;;  %v3006_v11 = vunpack.i.h.bf16 %v3004_v26  ;;  %v3005_v43 = vunpack.i.l.bf16 %v3004_v26  ;;  %v810_v26 = vld [vmem:[#allocation3 + $0x8] sm:$0xff] }
 0x192   : > { %v835_v46 = vpack.c.bf16 %v620_v40, %v619_v39  ;;  %v3012_v17 = vunpack.i.h.bf16 %v3010_v30  ;;  %v3011_v39 = vunpack.i.l.bf16 %v3010_v30 }
 0x193   : > { %v632_v51 = vsub.f32 %v611_v55, %v631_v45  ;;  %v633_v52 = vsub.f32 %v612_v56, %v631_v45  ;;  %v634_v4 = vsub.f32 %v613_v58, %v631_v45  ;;  %v635_v60 = vsub.f32 %v614_v59, %v631_v45 }
 0x194   : > { %2626 = vmatprep.subr.bf16.mxu1 %v835_v46 }
 0x195   : > { %v636_v57 = vmul.f32 1.442695, %v632_v51  ;;  %2627 = vmatpush3.bf16.xpose.msra.mxu1 %v835_v46  ;;  %v638_v61 = vmul.f32 1.442695, %v633_v52  ;;  %v640_v62 = vmul.f32 1.442695, %v634_v4  ;;  %v458_v51 = vmul.f32 %v3012_v17, %v3530_v28 }
 0x196   : > { %v642_v63 = vmul.f32 1.442695, %v635_v60  ;;  %v394_v52 = vmul.f32 %v3006_v11, %v3532_v33  ;;  %v457_v4 = vmul.f32 %v3011_v39, %v3530_v28  ;;  %v811_v39 = vld [vmem:[#allocation3 + $0x10] sm:$0xff] }
 0x197   : > { %3028 = vpow2.f32 %v636_v57 }
 0x198   : > { %3030 = vpow2.f32 %v638_v61 }
 0x199   : > { %3032 = vpow2.f32 %v640_v62 }
 0x19a   : > { %3034 = vpow2.f32 %v642_v63 }
 0x1a1   : > { %v3029_v0 = vpop.eup %3028 }
 0x1a2   : > { %v3031_v1 = vpop.eup %3030 }
 0x1a3   : > { %v644_v2 = vadd.f32 %v3031_v1, %v3029_v0  ;;  %v3033_v3 = vpop.eup %3032 }
 0x1a4   : > { %v3035_v55 = vpop.eup %3034 }
 0x1a5   : > { %v645_v14 = vadd.f32 %v3033_v3, %v644_v2 }
 0x1a7   : > { %v646_v56 = vadd.f32 %v3035_v55, %v645_v14 }
 0x1a9   : > { %v647_v58 = vrot.slane %v646_v56, 4 }
 0x1ab   : > { %v648_v5 = vadd.f32 %v647_v58, %v646_v56 }
 0x1ad   : > { %v649_v6 = vrot.slane %v648_v5, 2 }
 0x1af   : > { %v650_v9 = vadd.f32 %v649_v6, %v648_v5 }
 0x1b1   : > { %v651_v59 = vrot.slane %v650_v9, 1 }
 0x1b3   : > { %v652_v10 = vadd.f32 %v651_v59, %v650_v9 }
 0x1b5   : > { %3036 = vrcp.f32 %v652_v10 }
 0x1b6   : > { %3038 = vpow2.f32 %v769_v24 }
 0x1bf   : > { %v3037_v13 = vpop.eup %3036 }
 0x1c0   : > { %v654_v12 = vmul.f32 0.17677669, %v3037_v13  ;;  %v3659_v25 = vpop.eup %3038 }
 0x1c2   : > { %v656_v15 = vmul.f32 %v3031_v1, %v654_v12  ;;  %v655_v18 = vmul.f32 %v3029_v0, %v654_v12  ;;  %v658_v19 = vmul.f32 %v3035_v55, %v654_v12  ;;  %v657_v20 = vmul.f32 %v3033_v3, %v654_v12 }
 0x1c3   : > { %v773_v12 = vmul.f32 1.442695, %v767_v50  ;;  %v669_v50 = vld [vmem:[#allocation5 + $0x18] sm:$0xff] }
 0x1c4   : > { %672 = vadd.xlane.f32.xlu0 %v656_v15  ;;  %670 = vadd.xlane.f32.xlu1 %v655_v18  ;;  %v659_v22 = vpack.c.bf16 %v656_v15, %v655_v18  ;;  %v660_v23 = vpack.c.bf16 %v658_v19, %v657_v20  ;;  %v775_v15 = vmul.f32 1.442695, %v768_v54 }
 0x1c6   : > { %664 = vst [vmem:[%s663_s26] sm:$0xff] %v659_v22  ;;  %2618 = vmatprep.subr.bf16.mxu0 %v659_v22  ;;  %2622 = vmatprep.mubr.bf16.mxu0 %v659_v22  ;;  %665 = vst [vmem:[%s663_s26 + $0x8] sm:$0xff] %v660_v23 }
 0x1c7   : > { %2619 = vmatpush3.bf16.xpose.msra.mxu0 %v659_v22 }
 0x1c8   : > { %676 = vadd.xlane.f32.xlu0 %v658_v19  ;;  %674 = vadd.xlane.f32.xlu1 %v657_v20 }
 0x1c9   : > { %2620 = vmatprep.subr.bf16.mxu0 %v660_v23 }
 0x1cf   : > { %2621 = vmatpush3.bf16.xpose.msra.mxu0 %v660_v23 }
 0x1d6   : > { %2623 = vmatmul.mubr.bf16.vlgmr.msra.gmra.mrb[0].mxu0 %v660_v23  ;;  %v668_v23 = vld [vmem:[#allocation5 + $0x10] sm:$0xff] }
 0x1d9   : > { %892 = vperm.xlu1 %3026, %v3659_v25  }
 0x1e5   : > { %v780_v27 = vpop.permute.xlu1 %779 }
 0x1e6   : > { %v797_v29 = vsub.f32 %v3552_v8, %v780_v27 }
 0x1e8   : > { %v801_v31 = vmul.f32 1.442695, %v797_v29 }
 0x1e9   : > { %v785_v32 = vpop.permute.xlu1 %784  ;;  %v790_v36 = vpop.permute.xlu0 %789 }
 0x1ea   : > { %v798_v34 = vsub.f32 %v3550_v7, %v785_v32  ;;  %3040 = vpow2.f32 %v801_v31  ;;  %v799_v8 = vsub.f32 %v3559_v16, %v790_v36  ;;  %v393_v7 = vmul.f32 %v3005_v43, %v3532_v33  ;;  %v812_v31 = vld [vmem:[#allocation3 + $0x18] sm:$0xff] }
 0x1ec   : > { %v803_v38 = vmul.f32 1.442695, %v798_v34  ;;  %v805_v63 = vmul.f32 1.442695, %v799_v8  ;;  %v469_v2 = vadd.f32 %v457_v4, %v393_v7  ;;  %v809_v34 = vld [vmem:[#allocation3] sm:$0xff]  ;;  %v689_v8 = vld [vmem:[#allocation6 + $0x10] sm:$0xff] }
 0x1ed   : > { %v795_v40 = vpop.permute.xlu1 %794  ;;  %v813_v17 = vmul.f32 %v3659_v25, %v809_v34  ;;  %v690_v4 = vld [vmem:[#allocation6 + $0x18] sm:$0xff] }
 0x1ee   : > { %3042 = vpow2.f32 %v803_v38  ;;  %v800_v45 = vsub.f32 %v3563_v21, %v795_v40  ;;  %v3023_v46 = vpop.permute.xlu0 %3022  ;;  %v470_v21 = vadd.f32 %v458_v51, %v394_v52  ;;  %v687_v52 = vld [vmem:[#allocation6] sm:$0xff] }
 0x1ef   : > { %v3025_v60 = vunpack.i.h.bf16 %v3023_v46  ;;  %v3024_v61 = vunpack.i.l.bf16 %v3023_v46 }
 0x1f0   : > { %v807_v57 = vmul.f32 1.442695, %v800_v45 }
 0x1f1   : > { %v610_v14 = vmul.f32 %v3025_v60, %v3542_v49  ;;  %v609_v33 = vmul.f32 %v3024_v61, %v3542_v49  ;;  %v771_v49 = vmul.f32 1.442695, %v766_v42  ;;  %v688_v60 = vld [vmem:[#allocation6 + $0x8] sm:$0xff] }
 0x1f2   : > { %3044 = vpow2.f32 %v807_v57  ;;  %v3017_v62 = vpop.permute.xlu1 %3016 }
 0x1f3   : > { %v3019_v0 = vunpack.i.h.bf16 %v3017_v62  ;;  %v3018_v1 = vunpack.i.l.bf16 %v3017_v62  ;;  %3046 = vpow2.f32 %v805_v63 }
 0x1f4   : > { %v3041_v55 = vpop.eup %3040  ;;  %3048 = vpow2.f32 %v771_v49 }
 0x1f5   : > { %v534_v3 = vmul.f32 %v3019_v0, %v3534_v35  ;;  %v533_v16 = vmul.f32 %v3018_v1, %v3534_v35  ;;  %3050 = vpow2.f32 %v773_v12 }
 0x1f6   : > { %3052 = vpow2.f32 %v775_v15 }
 0x1f7   : > { %v545_v56 = vadd.f32 %v533_v16, %v469_v2  ;;  %v546_v58 = vadd.f32 %v534_v3, %v470_v21  ;;  %v888_v2 = vld [vmem:[#allocation4 + $0x10] sm:$0xff]  ;;  %v886_v3 = vld [vmem:[#allocation4] sm:$0xff]  ;;  %v889_v16 = vld [vmem:[#allocation4 + $0x18] sm:$0xff] }
 0x1f8   : > { %v3043_v28 = vpop.eup %3042 }
 0x1f9   : > { %819 = vadd.xlane.f32.xlu0 %v3043_v28  ;;  %v833_v5 = vpack.c.bf16 %v3043_v28, %v3041_v55  ;;  %v621_v6 = vadd.f32 %v609_v33, %v545_v56  ;;  %v622_v9 = vadd.f32 %v610_v14, %v546_v58 }
 0x1fb   : > { %2630 = vmatprep.mubr.bf16.mxu1 %v833_v5  ;;  %v836_v59 = vpack.c.bf16 %v622_v9, %v621_v6 }
 0x1fc   : > { %v3045_v10 = vpop.eup %3044 }
 0x1fd   : > { %2628 = vmatprep.subr.bf16.mxu1 %v836_v59  ;;  %823 = vadd.xlane.f32.xlu0 %v3045_v10  ;;  %v3047_v35 = vpop.eup %3046 }
 0x1fe   : > { %817 = vadd.xlane.f32.xlu1 %v3041_v55  ;;  %2629 = vmatpush3.bf16.xpose.msra.mxu1 %v836_v59  ;;  %v834_v13 = vpack.c.bf16 %v3045_v10, %v3047_v35  ;;  %v3049_v18 = vpop.eup %3048  ;;  %v887_v55 = vld [vmem:[#allocation4 + $0x8] sm:$0xff] }
 0x1ff   : > { %v3051_v19 = vpop.eup %3050  ;;  %v814_v27 = vmul.f32 %v3049_v18, %v810_v26 }
 0x200   : > { %v3053_v20 = vpop.eup %3052  ;;  %v815_v45 = vmul.f32 %v3051_v19, %v811_v39 }
 0x201   : > { %v816_v36 = vmul.f32 %v3053_v20, %v812_v31 }
 0x202   : > { %821 = vadd.xlane.f32.xlu1 %v3047_v35 }
 0x205   : > { %2631 = vmatmul.mubr.bf16.vlgmr.msra.gmra.mrb[0].mxu1 %v834_v13 }
 0x213   : > { %902 = vperm.xlu1 %3026, %v3051_v19   ;;  %897 = vperm.xlu0 %3027, %v3049_v18  }
 0x217   : > { %907 = vperm.xlu1 %3026, %v3053_v20  }
 0x251   : > { %v673_v42 = vpop.xlane.xlu0 %672  ;;  %v671_v22 = vpop.xlane.xlu1 %670 }
 0x252   : > { %v679_v44 = vadd.f32 %v673_v42, %v667_v37  ;;  %v678_v47 = vadd.f32 %v671_v22, %v666_v41 }
 0x254   : > { %684 = vst.msk [vmem:[#allocation5 + $0x8] sm:$0xff] %vm682_vm2, %v679_v44  ;;  %683 = vst.msk [vmem:[#allocation5] sm:$0xff] %vm682_vm2, %v678_v47 }
 0x255   : > { %v677_v48 = vpop.xlane.xlu0 %676  ;;  %v675_v53 = vpop.xlane.xlu1 %674 }
 0x256   : > { %v681_v54 = vadd.f32 %v677_v48, %v669_v50  ;;  %v680_v24 = vadd.f32 %v675_v53, %v668_v23 }
 0x258   : > { %686 = vst.msk [vmem:[#allocation5 + $0x18] sm:$0xff] %vm682_vm2, %v681_v54  ;;  %685 = vst.msk [vmem:[#allocation5 + $0x10] sm:$0xff] %vm682_vm2, %v680_v24 }
 0x259   : > { %v893_v32 = vpop.permute.xlu1 %892 }
 0x25a   : > { %v910_v56 = vmul.f32 %v893_v32, %v886_v3 }
 0x286   : > { %v820_v29 = vpop.xlane.xlu0 %819 }
 0x287   : > { %v826_v30 = vadd.f32 %v820_v29, %v814_v27 }
 0x289   : > { %830 = vst.msk [vmem:[#allocation3 + $0x8] sm:$0xff] %vm682_vm2, %v826_v30 }
 0x28a   : > { %v824_v38 = vpop.xlane.xlu0 %823 }
 0x28b   : > { %v818_v11 = vpop.xlane.xlu1 %817  ;;  %v828_v43 = vadd.f32 %v824_v38, %v816_v36 }
 0x28c   : > { %v825_v40 = vadd.f32 %v818_v11, %v813_v17 }
 0x28d   : > { %832 = vst.msk [vmem:[#allocation3 + $0x18] sm:$0xff] %vm682_vm2, %v828_v43 }
 0x28e   : > { %829 = vst.msk [vmem:[#allocation3] sm:$0xff] %vm682_vm2, %v825_v40 }
 0x28f   : > { %v822_v46 = vpop.xlane.xlu1 %821 }
 0x290   : > { %v827_v51 = vadd.f32 %v822_v46, %v815_v45 }
 0x292   : > { %831 = vst.msk [vmem:[#allocation3 + $0x10] sm:$0xff] %vm682_vm2, %v827_v51  ;;  %v898_v28 = vpop.permute.xlu0 %897 }
 0x293   : > { %v903_v21 = vpop.permute.xlu1 %902  ;;  %v911_v59 = vmul.f32 %v898_v28, %v887_v55 }
 0x294   : > { %v912_v33 = vmul.f32 %v903_v21, %v888_v2 }
 0x297   : > { %v908_v14 = vpop.permute.xlu1 %907 }
 0x298   : > { %v913_v5 = vmul.f32 %v908_v14, %v889_v16 }
 0x2a9   : > { %v2624_v7 = vpop.f32.mrb[0].mxu0 }
 0x2aa   : > { %v742_v25 = vadd.f32 %v2624_v7, %v689_v8  ;;  %v725_v57 = vpop.f32.mrb[1].mxu0 }
 0x2ab   : > { %v740_v61 = vadd.f32 %v725_v57, %v687_v52  ;;  %v2625_v62 = vpop.f32.mrb[2].mxu0 }
 0x2ac   : > { %747 = vst.msk [vmem:[#allocation6 + $0x10] sm:$0xff] %vm744_vm3, %v742_v25  ;;  %v743_v63 = vadd.f32 %v2625_v62, %v690_v4  ;;  %v728_v0 = vpop.f32.mrb[3].mxu0 }
 0x2ad   : > { %745 = vst.msk [vmem:[#allocation6] sm:$0xff] %vm744_vm3, %v740_v61  ;;  %v741_v1 = vadd.f32 %v728_v0, %v688_v60 }
 0x2ae   : > { %748 = vst.msk [vmem:[#allocation6 + $0x18] sm:$0xff] %vm744_vm3, %v743_v63 }
 0x2af   : > { %746 = vst.msk [vmem:[#allocation6 + $0x8] sm:$0xff] %vm744_vm3, %v741_v1 }
 0x2d8   : > { %v2632_v58 = vpop.f32.mrb[0].mxu1 }
 0x2d9   : > { %v916_v6 = vadd.f32 %v2632_v58, %v912_v33  ;;  %v871_v9 = vpop.f32.mrb[1].mxu1 }
 0x2da   : > { %v914_v10 = vadd.f32 %v910_v56, %v871_v9  ;;  %v2633_v35 = vpop.f32.mrb[2].mxu1 }
 0x2db   : > { %920 = vst.msk [vmem:[#allocation4 + $0x10] sm:$0xff] %vm744_vm3, %v916_v6  ;;  %v917_v49 = vadd.f32 %v2633_v35, %v913_v5  ;;  %v874_v13 = vpop.f32.mrb[3].mxu1 }
 0x2dc   : > { %918 = vst.msk [vmem:[#allocation4] sm:$0xff] %vm744_vm3, %v914_v10  ;;  %v915_v12 = vadd.f32 %v911_v59, %v874_v13 }
 0x2dd   : > { %921 = vst.msk [vmem:[#allocation4 + $0x18] sm:$0xff] %vm744_vm3, %v917_v49 }
 0x2de   : > { %919 = vst.msk [vmem:[#allocation4 + $0x8] sm:$0xff] %vm744_vm3, %v915_v12 }
 0x2df PF: > { %p2453_p4 = scmp.ne.s32.totalorder %s3321_s18, 3 }
 0x2e0   : > { %s4091_s1 = sld [smem:[#allocation20_spill]] (!%p2453_p4)  ;;  %v3353_v19 = vmov (!%p2453_p4), 0   ;;  %v3354_v47 = vmov (!%p2453_p4), 1   ;;  %v3355_v50 = vmov (!%p2453_p4), 2   ;;  %v3356_v48 = vmov (!%p2453_p4), 3   ;;  %s2454_s28 = sshll.u32 (!%p2453_p4), %s3321_s18, 7 }
 0x2e1   : > { %929 = sbr.rel (%p2453_p4) target bundleno = 2789 (0xae5), region = 52  ;;  %3066 = vset.pattern.permute.xlu1 (!%p2453_p4), %v3353_v19  ;;  %3054 = vset.pattern.permute.xlu0 (!%p2453_p4), %v3353_v19  ;;  %v1015_v26 = vlaneseq (!%p2453_p4)  ;;  %v930_v17 = vld [vmem:[%s3493_s27] sm:$0xf] (!%p2453_p4)  ;;  %v1262_v61 = vstv (!%p2453_p4), %s2454_s28  ;;  %vm1338_vm5 = vcmask (!%p2453_p4), 7168   ;;  %s2501_s8 = sshll.u32 (!%p2453_p4), %s3321_s18, 4  ;;  %vm1400_vm7 = vcmask (!%p2453_p4), 261120  }
 0x2e2   : > { %s1319_s9 = scalar_lea.vmem (!%p2453_p4), [#allocation7], %s2501_s8  ;;  %vm3358_vm8 = vmmov (!%p2453_p4), 0   ;;  %s4094_s3 = sld [smem:[#allocation21_spill]] (!%p2453_p4)  ;;  %vm2091_vm9 = vcmask (!%p2453_p4), 3072   ;;  %vm2115_vm10 = vcmask (!%p2453_p4), 257024  }
 0x2e3   : > { %v1016_v30 = vshrl.u32 (!%p2453_p4), %v1015_v26, 7  ;;  %v1260_v4 = vand.u32 (!%p2453_p4), 127, %v1015_v26 }
 0x2e5   : > { %v1081_v31 = vsub.s32 (!%p2453_p4), 1, %v1016_v30  ;;  %v1017_v36 = vsub.s32 (!%p2453_p4), 0, %v1016_v30  ;;  %v1157_v38 = vsub.s32 (!%p2453_p4), 2, %v1016_v30  ;;  %v1233_v7 = vsub.s32 (!%p2453_p4), 3, %v1016_v30 }
 0x2e6   : > { %v2558_v15 = vld [vmem:[%s4091_s1 + $0x18] sm:$0xff] (!%p2453_p4)   ;;  %v2557_v18 = vld [vmem:[%s4091_s1 + $0x10] sm:$0xff] (!%p2453_p4)   ;;  %v2528_v23 = vld [vmem:[%s4091_s1] sm:$0xff] (!%p2453_p4)   ;;  %v3740_v5 = vadd.s32 (!%p2453_p4), %v1262_v61, %v1260_v4 }
 0x2e7   : > { %v2541_v20 = vunpack.c.l.bf16 (!%p2453_p4), %v2558_v15  ;;  %v2542_v37 = vunpack.c.h.bf16 (!%p2453_p4), %v2558_v15  ;;  %v2537_v41 = vunpack.c.l.bf16 (!%p2453_p4), %v2557_v18  ;;  %v2538_v42 = vunpack.c.h.bf16 (!%p2453_p4), %v2557_v18 }
 0x2e8   : > { %v2529_v53 = vunpack.c.l.bf16 %v2528_v23  ;;  %v2530_v54 = vunpack.c.h.bf16 %v2528_v23  ;;  %v3724_v11 = vrot.slane %v930_v17, %v1081_v31  ;;  %v3727_v46 = vrot.slane %v930_v17, %v1017_v36 }
 0x2e9   : > { %v3067_v22 = vpack.i.bf16 %v2542_v37, %v2541_v20  ;;  %v3055_v44 = vpack.i.bf16 %v2538_v42, %v2537_v41  ;;  %v3729_v8 = vrot.slane %v930_v17, %v1157_v38  ;;  %v3737_v33 = vrot.slane %v930_v17, %v1233_v7 }
 0x2ea   : > { %v3718_v24 = vpack.i.bf16 %v2530_v54, %v2529_v53  ;;  %vm1264_vm4 = vcmp.lt.s32.totalorder %v3740_v5, 432 }
 0x2eb   : > { %3068 = vperm.xlu1 %3066, %v3067_v22   ;;  %3056 = vperm.xlu0 %3054, %v3055_v44   ;;  %vm3864_vm6 = vmpackc.low %vm1264_vm4, %vm1264_vm4 }
 0x2ef   : > { %3072 = vset.pattern.permute.xlu1 %v3354_v47  ;;  %3060 = vset.pattern.permute.xlu0 %v3354_v47 }
 0x2f0   : > { %3074 = vperm.xlu1 %3072, %v3067_v22   ;;  %3062 = vperm.xlu0 %3060, %v3055_v44  }
 0x2f4   : > { %3078 = vset.pattern.permute.xlu1 %v3355_v50  ;;  %3084 = vset.pattern.permute.xlu0 %v3355_v50 }
 0x2f5   : > { %3080 = vperm.xlu1 %3078, %v3055_v44   ;;  %3086 = vperm.xlu0 %3084, %v3067_v22  }
 0x2f9   : > { %3090 = vset.pattern.permute.xlu1 %v3356_v48  ;;  %3107 = vset.pattern.permute.xlu0 %v3353_v19 }
 0x2fa   : > { %3092 = vperm.xlu1 %3090, %v3055_v44  }
 0x2fe   : > { %3097 = vperm.xlu1 %3090, %v3067_v22  }
 0x302   : > { %3101 = vset.pattern.permute.xlu1 %v3353_v19 }
 0x303   : > { %3103 = vperm.xlu1 %3101, %v3718_v24  }
 0x307   : > { %3113 = vset.pattern.permute.xlu1 %v3354_v47 }
 0x36a   : > { %v3069_v27 = vpop.permute.xlu1 %3068  ;;  %v3057_v29 = vpop.permute.xlu0 %3056 }
 0x36b   : > { %v3059_v43 = vunpack.i.h.bf16 %v3057_v29  ;;  %v3058_v39 = vunpack.i.l.bf16 %v3057_v29  ;;  %v3070_v21 = vunpack.i.l.bf16 %v3069_v27  ;;  %v3071_v55 = vunpack.i.h.bf16 %v3069_v27 }
 0x36d   : > { %v1023_v62 = vmul.f32 %v3058_v39, %v3727_v46  ;;  %v1024_v63 = vmul.f32 %v3059_v43, %v3727_v46  ;;  %v1025_v35 = vmul.f32 %v3070_v21, %v3727_v46  ;;  %v1026_v37 = vmul.f32 %v3071_v55, %v3727_v46  ;;  %v2556_v39 = vld [vmem:[%s4091_s1 + $0x8] sm:$0xff]  }
 0x36f   : > { %v3075_v32 = vpop.permute.xlu1 %3074  ;;  %v3063_v34 = vpop.permute.xlu0 %3062 }
 0x370   : > { %v3065_v40 = vunpack.i.h.bf16 %v3063_v34  ;;  %v3064_v45 = vunpack.i.l.bf16 %v3063_v34  ;;  %v3076_v25 = vunpack.i.l.bf16 %v3075_v32  ;;  %v3077_v2 = vunpack.i.h.bf16 %v3075_v32 }
 0x372   : > { %v1087_v0 = vmul.f32 %v3064_v45, %v3724_v11  ;;  %v1088_v1 = vmul.f32 %v3065_v40, %v3724_v11  ;;  %v1089_v28 = vmul.f32 %v3076_v25, %v3724_v11  ;;  %v1090_v49 = vmul.f32 %v3077_v2, %v3724_v11  ;;  %v2560_v25 = vld [vmem:[%s4091_s1 + $0x28] sm:$0xff]  }
 0x373   : > { %v2533_v40 = vunpack.c.l.bf16 %v2556_v39  ;;  %v2534_v45 = vunpack.c.h.bf16 %v2556_v39  ;;  %v2550_v61 = vunpack.c.h.bf16 %v2560_v25 }
 0x374   : > { %v3081_v51 = vpop.permute.xlu1 %3080  ;;  %v3087_v52 = vpop.permute.xlu0 %3086  ;;  %v1099_v6 = vadd.f32 %v1087_v0, %v1023_v62  ;;  %v1100_v9 = vadd.f32 %v1088_v1, %v1024_v63  ;;  %v1101_v41 = vadd.f32 %v1089_v28, %v1025_v35  ;;  %v1102_v26 = vadd.f32 %v1090_v49, %v1026_v37  ;;  %v3793_v63 = vld [vmem:[#allocation2 + $0x8] sm:$0xff]  ;;  %v3795_v0 = vld [vmem:[#allocation2] sm:$0xff] }
 0x375   : > { %v3083_v57 = vunpack.i.h.bf16 %v3081_v51  ;;  %v3082_v60 = vunpack.i.l.bf16 %v3081_v51  ;;  %v3088_v3 = vunpack.i.l.bf16 %v3087_v52  ;;  %v3089_v56 = vunpack.i.h.bf16 %v3087_v52  ;;  %v2559_v52 = vld [vmem:[%s4091_s1 + $0x20] sm:$0xff]  }
 0x376   : > { %v3119_v51 = vpack.i.bf16 %v2534_v45, %v2533_v40  ;;  %v2545_v7 = vunpack.c.l.bf16 %v2559_v52  ;;  %v2546_v4 = vunpack.c.h.bf16 %v2559_v52 }
 0x377   : > { %v1163_v16 = vmul.f32 %v3082_v60, %v3729_v8  ;;  %v1164_v14 = vmul.f32 %v3083_v57, %v3729_v8  ;;  %v1165_v13 = vmul.f32 %v3088_v3, %v3729_v8  ;;  %v1166_v42 = vmul.f32 %v3089_v56, %v3729_v8 }
 0x378   : > { %v3159_v57 = vpack.i.bf16 %v2546_v4, %v2545_v7  ;;  %v2549_v60 = vunpack.c.l.bf16 %v2560_v25 }
 0x379   : > { %v3093_v58 = vpop.permute.xlu1 %3092  ;;  %v1176_v18 = vadd.f32 %v1164_v14, %v1100_v9  ;;  %v1175_v20 = vadd.f32 %v1163_v16, %v1099_v6  ;;  %v1177_v27 = vadd.f32 %v1165_v13, %v1101_v41  ;;  %v1178_v36 = vadd.f32 %v1166_v42, %v1102_v26  ;;  %v3812_v14 = vld [vmem:[#allocation2 + $0x10] sm:$0xff] }
 0x37a   : > { %v3095_v59 = vunpack.i.h.bf16 %v3093_v58  ;;  %v3094_v10 = vunpack.i.l.bf16 %v3093_v58  ;;  %v3177_v62 = vpack.i.bf16 %v2550_v61, %v2549_v60  ;;  %v3818_v58 = vld [vmem:[#allocation2 + $0x18] sm:$0xff] }
 0x37c   : > { %v1239_v12 = vmul.f32 %v3094_v10, %v3737_v33  ;;  %v1240_v15 = vmul.f32 %v3095_v59, %v3737_v33 }
 0x37d   : > { %v3098_v22 = vpop.permute.xlu1 %3097 }
 0x37e   : > { %v3100_v44 = vunpack.i.h.bf16 %v3098_v22  ;;  %v3099_v23 = vunpack.i.l.bf16 %v3098_v22  ;;  %v1252_v53 = vadd.f32 %v1240_v15, %v1176_v18  ;;  %v1251_v54 = vadd.f32 %v1239_v12, %v1175_v20 }
 0x380   : > { %v1241_v29 = vmul.f32 %v3099_v23, %v3737_v33  ;;  %v1242_v30 = vmul.f32 %v3100_v44, %v3737_v33  ;;  %v3754_v31 = vsel %vm1264_vm4, %v1252_v53, -inf  ;;  %v3758_v32 = vsel %vm1264_vm4, %v1251_v54, -inf }
 0x381   : > { %1411 = vmax.xlane.f32.xlu1 %v3754_v31  ;;  %1409 = vmax.xlane.f32.xlu0 %v3758_v32 }
 0x382   : > { %v1253_v34 = vadd.f32 %v1241_v29, %v1177_v27  ;;  %v1254_v38 = vadd.f32 %v1242_v30, %v1178_v36 }
 0x384   : > { %v3764_v17 = vsel %vm1264_vm4, %v1253_v34, -inf  ;;  %v3769_v43 = vsel %vm1264_vm4, %v1254_v38, -inf }
 0x385   : > { %1413 = vmax.xlane.f32.xlu0 %v3764_v17 }
 0x389   : > { %1415 = vmax.xlane.f32.xlu0 %v3769_v43 }
 0x392   : > { %3115 = vperm.xlu1 %3113, %v3718_v24  }
 0x396   : > { %3120 = vperm.xlu1 %3113, %v3119_v51  }
 0x39a   : > { %3124 = vset.pattern.permute.xlu1 %v3355_v50 }
 0x39b   : > { %3126 = vperm.xlu1 %3124, %v3718_v24  }
 0x39f   : > { %3131 = vperm.xlu1 %3124, %v3119_v51   ;;  %3109 = vperm.xlu0 %3107, %v3119_v51  }
 0x3a3   : > { %3135 = vset.pattern.permute.xlu1 %v3356_v48  ;;  %3158 = vset.pattern.permute.xlu0 %v3355_v50 }
 0x3a4   : > { %3137 = vperm.xlu1 %3135, %v3718_v24   ;;  %3160 = vperm.xlu0 %3158, %v3159_v57   ;;  %v3104_v24 = vpop.permute.xlu1 %3103 }
 0x3a5   : > { %v3106_v20 = vunpack.i.h.bf16 %v3104_v24  ;;  %v3105_v37 = vunpack.i.l.bf16 %v3104_v24 }
 0x3a7   : > { %v1020_v34 = vmul.f32 %v3106_v20, %v3727_v46 }
 0x3a8   : > { %3142 = vperm.xlu1 %3135, %v3119_v51   ;;  %3176 = vset.pattern.permute.xlu0 %v3354_v47 }
 0x3a9   : > { %3178 = vperm.xlu0 %3176, %v3177_v62  }
 0x3ac   : > { %3146 = vset.pattern.permute.xlu1 %v3353_v19 }
 0x3ad   : > { %3148 = vperm.xlu1 %3146, %v3159_v57   ;;  %3182 = vset.pattern.permute.xlu0 %v3353_v19 }
 0x3b1   : > { %3152 = vset.pattern.permute.xlu1 %v3354_v47 }
 0x3b2   : > { %3154 = vperm.xlu1 %3152, %v3159_v57  }
 0x3b6   : > { %3164 = vset.pattern.permute.xlu1 %v3356_v48 }
 0x3b7   : > { %3166 = vperm.xlu1 %3164, %v3159_v57  }
 0x3bb   : > { %3170 = vset.pattern.permute.xlu1 %v3353_v19 }
 0x3bc   : > { %3172 = vperm.xlu1 %3170, %v3177_v62  }
 0x40e   : > { %v1412_v1 = vpop.xlane.xlu1 %1411  ;;  %v1410_v21 = vpop.xlane.xlu0 %1409 }
 0x40f   : > { %v3798_v2 = vmax.f32 %v3793_v63, %v1412_v1  ;;  %v3801_v47 = vmax.f32 %v3795_v0, %v1410_v21 }
 0x411   : > { %v1422_v3 = vsub.f32 %v3793_v63, %v3798_v2  ;;  %1579 = vst.msk [vmem:[#allocation2 + $0x8] sm:$0xff] %vm1338_vm5, %v3798_v2  ;;  %v1421_v16 = vsub.f32 %v3795_v0, %v3801_v47  ;;  %1578 = vst.msk [vmem:[#allocation2] sm:$0xff] %vm1338_vm5, %v3801_v47  ;;  %1435 = vperm.xlu1 %3170, %v3801_v47   ;;  %v1466_v63 = vld [vmem:[#allocation3 + $0x8] sm:$0xff] }
 0x412   : > { %v3116_v55 = vpop.permute.xlu1 %3115  ;;  %v1414_v28 = vpop.xlane.xlu0 %1413 }
 0x413   : > { %v3815_v56 = vmax.f32 %v3812_v14, %v1414_v28  ;;  %v3118_v15 = vunpack.i.h.bf16 %v3116_v55  ;;  %v3117_v18 = vunpack.i.l.bf16 %v3116_v55 }
 0x415   : > { %1440 = vperm.xlu1 %3170, %v3798_v2   ;;  %v1423_v6 = vsub.f32 %v3812_v14, %v3815_v56  ;;  %1580 = vst.msk [vmem:[#allocation2 + $0x10] sm:$0xff] %vm1338_vm5, %v3815_v56  ;;  %1445 = vperm.xlu0 %3182, %v3815_v56   ;;  %v1084_v29 = vmul.f32 %v3118_v15, %v3724_v11  ;;  %v1465_v56 = vld [vmem:[#allocation3] sm:$0xff] }
 0x416   : > { %v3121_v9 = vpop.permute.xlu1 %3120  ;;  %v1416_v59 = vpop.xlane.xlu0 %1415  ;;  %v1083_v30 = vmul.f32 %v3117_v18, %v3724_v11 }
 0x417   : > { %v3826_v10 = vmax.f32 %v3818_v58, %v1416_v59  ;;  %v3123_v13 = vunpack.i.h.bf16 %v3121_v9  ;;  %v3122_v12 = vunpack.i.l.bf16 %v3121_v9  ;;  %v1096_v61 = vadd.f32 %v1084_v29, %v1020_v34 }
 0x419   : > { %v1424_v35 = vsub.f32 %v3818_v58, %v3826_v10  ;;  %1581 = vst.msk [vmem:[#allocation2 + $0x18] sm:$0xff] %vm1338_vm5, %v3826_v10  ;;  %1450 = vperm.xlu1 %3170, %v3826_v10   ;;  %3189 = vset.pattern.permute.xlu0 %v3356_v48  ;;  %v1086_v48 = vmul.f32 %v3123_v13, %v3724_v11 }
 0x41a   : > { %v3127_v49 = vpop.permute.xlu1 %3126  ;;  %3191 = vperm.xlu0 %3189, %v3177_v62   ;;  %v1085_v54 = vmul.f32 %v3122_v12, %v3724_v11 }
 0x41b   : > { %v3129_v22 = vunpack.i.h.bf16 %v3127_v49  ;;  %v3128_v44 = vunpack.i.l.bf16 %v3127_v49  ;;  %v1431_v0 = vmul.f32 1.442695, %v1424_v35 }
 0x41d   : > { %3183 = vset.pattern.permute.xlu1 %v3355_v50  ;;  %v1019_v50 = vmul.f32 %v3105_v37, %v3727_v46  ;;  %v1160_v39 = vmul.f32 %v3129_v22, %v3729_v8  ;;  %v1159_v40 = vmul.f32 %v3128_v44, %v3729_v8 }
 0x41e   : > { %v3132_v41 = vpop.permute.xlu1 %3131  ;;  %v3110_v42 = vpop.permute.xlu0 %3109  ;;  %3185 = vperm.xlu1 %3183, %v3177_v62   ;;  %3196 = vset.pattern.permute.xlu0 %v3353_v19 }
 0x41f   : > { %v3134_v23 = vunpack.i.h.bf16 %v3132_v41  ;;  %v3133_v53 = vunpack.i.l.bf16 %v3132_v41  ;;  %v3112_v26 = vunpack.i.h.bf16 %v3110_v42  ;;  %v3111_v27 = vunpack.i.l.bf16 %v3110_v42 }
 0x420   : > { %v1095_v60 = vadd.f32 %v1083_v30, %v1019_v50  ;;  %v1172_v21 = vadd.f32 %v1160_v39, %v1096_v61 }
 0x421   : > { %v1022_v36 = vmul.f32 %v3112_v26, %v3727_v46  ;;  %v1021_v38 = vmul.f32 %v3111_v27, %v3727_v46  ;;  %v1162_v45 = vmul.f32 %v3134_v23, %v3729_v8  ;;  %v1161_v51 = vmul.f32 %v3133_v53, %v3729_v8 }
 0x422   : > { %3195 = vset.pattern.permute.xlu1 %v3353_v19  ;;  %v1171_v1 = vadd.f32 %v1159_v40, %v1095_v60 }
 0x423   : > { %v3138_v52 = vpop.permute.xlu1 %3137  ;;  %v1098_v25 = vadd.f32 %v1086_v48, %v1022_v36  ;;  %v1097_v57 = vadd.f32 %v1085_v54, %v1021_v38  ;;  %v3161_v41 = vpop.permute.xlu0 %3160 }
 0x424   : > { %v3140_v7 = vunpack.i.h.bf16 %v3138_v52  ;;  %v3139_v4 = vunpack.i.l.bf16 %v3138_v52  ;;  %v3163_v53 = vunpack.i.h.bf16 %v3161_v41  ;;  %v3162_v54 = vunpack.i.l.bf16 %v3161_v41 }
 0x425   : > { %v1173_v59 = vadd.f32 %v1161_v51, %v1097_v57  ;;  %v1174_v49 = vadd.f32 %v1162_v45, %v1098_v25 }
 0x426   : > { %v1236_v62 = vmul.f32 %v3140_v7, %v3737_v33  ;;  %v1235_v24 = vmul.f32 %v3139_v4, %v3737_v33  ;;  %v1168_v36 = vmul.f32 %v3163_v53, %v3729_v8  ;;  %v1167_v45 = vmul.f32 %v3162_v54, %v3729_v8 }
 0x427   : > { %v3143_v55 = vpop.permute.xlu1 %3142 }
 0x428   : > { %v3145_v28 = vunpack.i.h.bf16 %v3143_v55  ;;  %v3144_v9 = vunpack.i.l.bf16 %v3143_v55  ;;  %v1247_v13 = vadd.f32 %v1235_v24, %v1171_v1  ;;  %v1248_v12 = vadd.f32 %v1236_v62, %v1172_v21 }
 0x42a   : > { %v1238_v19 = vmul.f32 %v3145_v28, %v3737_v33  ;;  %v1237_v15 = vmul.f32 %v3144_v9, %v3737_v33  ;;  %v1275_v22 = vmax.f32 %v1247_v13, %v1248_v12 }
 0x42c   : > { %v1249_v18 = vadd.f32 %v1237_v15, %v1173_v59  ;;  %v1250_v20 = vadd.f32 %v1238_v19, %v1174_v49  ;;  %v3149_v37 = vpop.permute.xlu1 %3148 }
 0x42d   : > { %v3151_v42 = vunpack.i.h.bf16 %v3149_v37  ;;  %v3150_v23 = vunpack.i.l.bf16 %v3149_v37 }
 0x42e   : > { %v1276_v44 = vmax.f32 %v1249_v18, %v1250_v20 }
 0x42f   : > { %v1028_v26 = vmul.f32 %v3151_v42, %v3727_v46  ;;  %v1027_v30 = vmul.f32 %v3150_v23, %v3727_v46 }
 0x430   : > { %v1277_v48 = vmax.f32 %v1275_v22, %v1276_v44 }
 0x431   : > { %v3155_v27 = vpop.permute.xlu1 %3154 }
 0x432   : > { %v1278_v29 = vrot.slane %v1277_v48, 4  ;;  %v3157_v50 = vunpack.i.h.bf16 %v3155_v27  ;;  %v3156_v34 = vunpack.i.l.bf16 %v3155_v27 }
 0x434   : > { %v1279_v38 = vmax.f32 %v1277_v48, %v1278_v29  ;;  %v1092_v39 = vmul.f32 %v3157_v50, %v3724_v11  ;;  %v1091_v40 = vmul.f32 %v3156_v34, %v3724_v11 }
 0x436   : > { %v1280_v51 = vrot.slane %v1279_v38, 2  ;;  %v1103_v52 = vadd.f32 %v1091_v40, %v1027_v30  ;;  %v1104_v7 = vadd.f32 %v1092_v39, %v1028_v26  ;;  %v3167_v4 = vpop.permute.xlu1 %3166 }
 0x437   : > { %v3169_v25 = vunpack.i.h.bf16 %v3167_v4  ;;  %v3168_v57 = vunpack.i.l.bf16 %v3167_v4 }
 0x438   : > { %v1281_v60 = vmax.f32 %v1279_v38, %v1280_v51  ;;  %v1179_v61 = vadd.f32 %v1167_v45, %v1103_v52  ;;  %v1180_v62 = vadd.f32 %v1168_v36, %v1104_v7 }
 0x439   : > { %v1244_v24 = vmul.f32 %v3169_v25, %v3737_v33  ;;  %v1243_v1 = vmul.f32 %v3168_v57, %v3737_v33 }
 0x43a   : > { %v1282_v21 = vrot.slane %v1281_v60, 1 }
 0x43b   : > { %v1255_v55 = vadd.f32 %v1243_v1, %v1179_v61  ;;  %v1256_v28 = vadd.f32 %v1244_v24, %v1180_v62  ;;  %v3173_v5 = vpop.permute.xlu1 %3172  ;;  %v3179_v1 = vpop.permute.xlu0 %3178 }
 0x43c   : > { %v1283_v9 = vmax.f32 %v1281_v60, %v1282_v21 }
 0x43d   : > { %v2470_v59 = vpack.c.bf16 %v1256_v28, %v1255_v55 }
 0x43e   : > { %v1284_v49 = vsub.f32 %v1247_v13, %v1283_v9  ;;  %v1285_v19 = vsub.f32 %v1248_v12, %v1283_v9  ;;  %v1286_v37 = vsub.f32 %v1249_v18, %v1283_v9  ;;  %v1287_v42 = vsub.f32 %v1250_v20, %v1283_v9 }
 0x43f   : > { %2642 = vmatprep.subr.msk.bf16.mxu1 %vm3864_vm6, %v2470_v59 }
 0x440   : > { %v1288_v41 = vmul.f32 1.442695, %v1284_v49  ;;  %2643 = vmatpush3.bf16.xpose.msk.msra.mxu1 %vm3864_vm6, %v2470_v59  ;;  %v1290_v22 = vmul.f32 1.442695, %v1285_v19  ;;  %v1292_v44 = vmul.f32 1.442695, %v1286_v37  ;;  %v3181_v19 = vunpack.i.h.bf16 %v3179_v1 }
 0x441   : > { %v1294_v13 = vmul.f32 1.442695, %v1287_v42  ;;  %v3174_v42 = vunpack.i.l.bf16 %v3173_v5 }
 0x442   : > { %3197 = vpow2.f32 %v1288_v41  ;;  %v3175_v41 = vunpack.i.h.bf16 %v3173_v5 }
 0x443   : > { %3199 = vpow2.f32 %v1290_v22  ;;  %v3180_v22 = vunpack.i.l.bf16 %v3179_v1 }
 0x444   : > { %3201 = vpow2.f32 %v1292_v44 }
 0x445   : > { %3203 = vpow2.f32 %v1294_v13 }
 0x44c   : > { %v3198_v12 = vpop.eup %3197 }
 0x44d   : > { %v3200_v23 = vpop.eup %3199 }
 0x44e   : > { %v1296_v53 = vadd.f32 %v3200_v23, %v3198_v12  ;;  %v3202_v48 = vpop.eup %3201 }
 0x44f   : > { %v3204_v54 = vpop.eup %3203 }
 0x450   : > { %v1297_v18 = vadd.f32 %v3202_v48, %v1296_v53  ;;  %v1030_v53 = vmul.f32 %v3175_v41, %v3727_v46 }
 0x452   : > { %v1298_v26 = vadd.f32 %v3204_v54, %v1297_v18 }
 0x454   : > { %v1299_v27 = vrot.slane %v1298_v26, 4 }
 0x456   : > { %v1300_v29 = vadd.f32 %v1299_v27, %v1298_v26 }
 0x458   : > { %v1301_v30 = vrot.slane %v1300_v29, 2 }
 0x45a   : > { %v1302_v50 = vadd.f32 %v1301_v30, %v1300_v29 }
 0x45c   : > { %v1303_v20 = vrot.slane %v1302_v50, 1 }
 0x45e   : > { %v1304_v34 = vadd.f32 %v1303_v20, %v1302_v50 }
 0x460   : > { %3205 = vrcp.f32 %v1304_v34 }
 0x46a   : > { %v3206_v36 = vpop.eup %3205 }
 0x46b   : > { %v1306_v38 = vmul.f32 0.17677669, %v3206_v36 }
 0x46d   : > { %v1307_v39 = vmul.f32 %v3198_v12, %v1306_v38  ;;  %v1308_v40 = vmul.f32 %v3200_v23, %v1306_v38  ;;  %v1309_v45 = vmul.f32 %v3202_v48, %v1306_v38  ;;  %v1310_v51 = vmul.f32 %v3204_v54, %v1306_v38 }
 0x46e   : > { %v1094_v23 = vmul.f32 %v3181_v19, %v3724_v11 }
 0x46f   : > { %v2458_v52 = vpack.c.bf16 %v1308_v40, %v1307_v39  ;;  %v3875_v7 = vsel %vm1264_vm4, %v1308_v40, 0.0  ;;  %v3879_v4 = vsel %vm1264_vm4, %v1309_v45, 0.0  ;;  %v3883_v25 = vsel %vm1264_vm4, %v1307_v39, 0.0 }
 0x470   : > { %v3887_v57 = vsel %vm1264_vm4, %v1310_v51, 0.0  ;;  %v2461_v60 = vpack.c.bf16 %v1310_v51, %v1309_v45  ;;  %v1315_v61 = vpack.c.bf16 %v3875_v7, %v3883_v25  ;;  %v1106_v50 = vadd.f32 %v1094_v23, %v1030_v53  ;;  %v1346_v23 = vld [vmem:[#allocation6 + $0x18] sm:$0xff] }
 0x471   : > { %2634 = vmatprep.subr.msk.bf16.mxu0 %vm3864_vm6, %v2458_v52  ;;  %2638 = vmatprep.mubr.msk.bf16.mxu0 %vm3864_vm6, %v2458_v52  ;;  %v1316_v62 = vpack.c.bf16 %v3887_v57, %v3879_v4 }
 0x472   : > { %2635 = vmatpush3.bf16.xpose.msk.msra.mxu0 %vm3864_vm6, %v2458_v52  ;;  %1320 = vst [vmem:[%s1319_s9] sm:$0xff] %v1315_v61 }
 0x473   : > { %2636 = vmatprep.subr.msk.bf16.mxu0 %vm3864_vm6, %v2461_v60  ;;  %1321 = vst [vmem:[%s1319_s9 + $0x8] sm:$0xff] %v1316_v62 }
 0x47a   : > { %2637 = vmatpush3.bf16.xpose.msk.msra.mxu0 %vm3864_vm6, %v2461_v60 }
 0x481   : > { %2639 = vmatmul.mubr.msk.bf16.vlgmr.msra.gmra.mrb[0].mxu0 %vm3864_vm6, %v2461_v60  ;;  %v1425_v60 = vmul.f32 1.442695, %v1421_v16  ;;  %v1427_v16 = vmul.f32 1.442695, %v1422_v3  ;;  %v1467_v3 = vld [vmem:[#allocation3 + $0x10] sm:$0xff] }
 0x490   : > { %v1436_v24 = vpop.permute.xlu1 %1435 }
 0x491   : > { %v1453_v21 = vsub.f32 %v3758_v32, %v1436_v24 }
 0x493   : > { %v1457_v55 = vmul.f32 1.442695, %v1453_v21 }
 0x494   : > { %v1441_v28 = vpop.permute.xlu1 %1440  ;;  %v1446_v59 = vpop.permute.xlu0 %1445 }
 0x495   : > { %3207 = vpow2.f32 %v1457_v55  ;;  %v1454_v9 = vsub.f32 %v3754_v31, %v1441_v28  ;;  %v1455_v49 = vsub.f32 %v3764_v17, %v1446_v59  ;;  %v1029_v31 = vmul.f32 %v3174_v42, %v3727_v46  ;;  %v1468_v55 = vld [vmem:[#allocation3 + $0x18] sm:$0xff] }
 0x496   : > { %v1093_v17 = vmul.f32 %v3180_v22, %v3724_v11 }
 0x497   : > { %v1459_v37 = vmul.f32 1.442695, %v1454_v9  ;;  %v1461_v44 = vmul.f32 1.442695, %v1455_v49 }
 0x498   : > { %v1451_v13 = vpop.permute.xlu1 %1450  ;;  %v1105_v20 = vadd.f32 %v1093_v17, %v1029_v31  ;;  %v1344_v17 = vld [vmem:[#allocation6 + $0x8] sm:$0xff] }
 0x499   : > { %3209 = vpow2.f32 %v1459_v37  ;;  %v1456_v12 = vsub.f32 %v3769_v43, %v1451_v13  ;;  %v3192_v32 = vpop.permute.xlu0 %3191  ;;  %v1345_v13 = vld [vmem:[#allocation6 + $0x10] sm:$0xff] }
 0x49a   : > { %3211 = vpow2.f32 %v1461_v44  ;;  %v3194_v18 = vunpack.i.h.bf16 %v3192_v32  ;;  %v3193_v54 = vunpack.i.l.bf16 %v3192_v32 }
 0x49b   : > { %v1463_v48 = vmul.f32 1.442695, %v1456_v12  ;;  %v1343_v12 = vld [vmem:[#allocation6] sm:$0xff] }
 0x49c   : > { %v1246_v36 = vmul.f32 %v3194_v18, %v3737_v33  ;;  %v1245_v46 = vmul.f32 %v3193_v54, %v3737_v33  ;;  %v1429_v33 = vmul.f32 1.442695, %v1423_v6 }
 0x49d   : > { %3213 = vpow2.f32 %v1463_v48  ;;  %v3186_v26 = vpop.permute.xlu1 %3185 }
 0x49e   : > { %v3188_v29 = vunpack.i.h.bf16 %v3186_v26  ;;  %v3187_v30 = vunpack.i.l.bf16 %v3186_v26  ;;  %3215 = vpow2.f32 %v1425_v60  ;;  %v1543_v60 = vld [vmem:[#allocation4 + $0x8] sm:$0xff] }
 0x49f   : > { %v3208_v27 = vpop.eup %3207  ;;  %3217 = vpow2.f32 %v1429_v33 }
 0x4a0   : > { %1473 = vadd.xlane.f32.xlu1 %v3208_v27  ;;  %v1170_v43 = vmul.f32 %v3188_v29, %v3729_v8  ;;  %v1169_v34 = vmul.f32 %v3187_v30, %v3729_v8  ;;  %3219 = vpow2.f32 %v1431_v0 }
 0x4a1   : > { %3221 = vpow2.f32 %v1427_v16 }
 0x4a2   : > { %v1181_v38 = vadd.f32 %v1169_v34, %v1105_v20  ;;  %v1182_v39 = vadd.f32 %v1170_v43, %v1106_v50  ;;  %v1323_v50 = vld [vmem:[#allocation5 + $0x8] sm:$0xff]  ;;  %v1324_v34 = vld [vmem:[#allocation5 + $0x10] sm:$0xff] }
 0x4a3   : > { %v3210_v11 = vpop.eup %3209 }
 0x4a4   : > { %v3212_v40 = vpop.eup %3211  ;;  %1475 = vadd.xlane.f32.xlu0 %v3210_v11  ;;  %v1489_v45 = vpack.c.bf16 %v3210_v11, %v3208_v27  ;;  %v1257_v51 = vadd.f32 %v1245_v46, %v1181_v38  ;;  %v1258_v52 = vadd.f32 %v1246_v36, %v1182_v39  ;;  %v1544_v39 = vld [vmem:[#allocation4 + $0x10] sm:$0xff] }
 0x4a5   : > { %1477 = vadd.xlane.f32.xlu1 %v3212_v40 }
 0x4a6   : > { %2646 = vmatprep.mubr.bf16.mxu1 %v1489_v45  ;;  %v2473_v61 = vpack.c.bf16 %v1258_v52, %v1257_v51  ;;  %v1545_v45 = vld [vmem:[#allocation4 + $0x18] sm:$0xff] }
 0x4a7   : > { %v3214_v8 = vpop.eup %3213 }
 0x4a8   : > { %1479 = vadd.xlane.f32.xlu0 %v3214_v8  ;;  %2644 = vmatprep.subr.msk.bf16.mxu1 %vm3864_vm6, %v2473_v61  ;;  %v1490_v47 = vpack.c.bf16 %v3214_v8, %v3212_v40  ;;  %v3216_v15 = vpop.eup %3215  ;;  %v1542_v40 = vld [vmem:[#allocation4] sm:$0xff] }
 0x4a9   : > { %2645 = vmatpush3.bf16.xpose.msk.msra.mxu1 %vm3864_vm6, %v2473_v61  ;;  %v3218_v62 = vpop.eup %3217  ;;  %v1469_v58 = vmul.f32 %v3216_v15, %v1465_v56 }
 0x4aa   : > { %v3220_v5 = vpop.eup %3219  ;;  %v1471_v35 = vmul.f32 %v3218_v62, %v1467_v3 }
 0x4ab   : > { %v3222_v14 = vpop.eup %3221 }
 0x4ac   : > { %v1470_v10 = vmul.f32 %v3222_v14, %v1466_v63 }
 0x4b0   : > { %2647 = vmatmul.mubr.bf16.vlgmr.msra.gmra.mrb[0].mxu1 %v1490_v47 }
 0x4b6   : > { %1548 = vperm.xlu1 %3195, %v3216_v15  }
 0x4ba   : > { %1558 = vperm.xlu1 %3195, %v3218_v62  }
 0x4be   : > { %1563 = vperm.xlu1 %3195, %v3220_v5   ;;  %1553 = vperm.xlu0 %3196, %v3222_v14  }
 0x4dd   : > { %1328 = vadd.xlane.f32.xlu0 %v3875_v7  ;;  %v1472_v7 = vmul.f32 %v3220_v5, %v1468_v55 }
 0x4e1   : > { %1330 = vadd.xlane.f32.xlu0 %v3879_v4 }
 0x52d   : > { %v1474_v6 = vpop.xlane.xlu1 %1473 }
 0x52e   : > { %v1481_v2 = vadd.f32 %v1474_v6, %v1469_v58 }
 0x530   : > { %1485 = vst.msk [vmem:[#allocation3] sm:$0xff] %vm1338_vm5, %v1481_v2 }
 0x531   : > { %v1476_v24 = vpop.xlane.xlu0 %1475 }
 0x532   : > { %v1478_v1 = vpop.xlane.xlu1 %1477  ;;  %v1482_v21 = vadd.f32 %v1476_v24, %v1470_v10 }
 0x533   : > { %v1483_v28 = vadd.f32 %v1478_v1, %v1471_v35 }
 0x534   : > { %1486 = vst.msk [vmem:[#allocation3 + $0x8] sm:$0xff] %vm1338_vm5, %v1482_v21 }
 0x535   : > { %1487 = vst.msk [vmem:[#allocation3 + $0x10] sm:$0xff] %vm1338_vm5, %v1483_v28  ;;  %v1480_v4 = vpop.xlane.xlu0 %1479 }
 0x536   : > { %v1484_v9 = vadd.f32 %v1480_v4, %v1472_v7  ;;  %v1549_v11 = vpop.permute.xlu1 %1548 }
 0x537   : > { %v1582_v59 = vld [vmem:[#allocation3] sm:$0xff]  ;;  %v1566_v61 = vmul.f32 %v1549_v11, %v1542_v40 }
 0x538   : > { %3223 = vrcp.f32 %v1582_v59  ;;  %1488 = vst.msk [vmem:[#allocation3 + $0x18] sm:$0xff] %vm1338_vm5, %v1484_v9  ;;  %v1322_v59 = vld [vmem:[#allocation5] sm:$0xff] }
 0x53a   : > { %v1559_v38 = vpop.permute.xlu1 %1558 }
 0x53b   : > { %v1583_v49 = vld [vmem:[#allocation3 + $0x8] sm:$0xff]  ;;  %v1568_v52 = vmul.f32 %v1559_v38, %v1544_v39  ;;  %v1626_v39 = vld [vmem:[%s4068_s2] sm:$0x3] }
 0x53c   : > { %3225 = vrcp.f32 %v1583_v49  ;;  %v1584_v19 = vld [vmem:[#allocation3 + $0x10] sm:$0xff] }
 0x53d   : > { %3227 = vrcp.f32 %v1584_v19  ;;  %v1554_v30 = vpop.permute.xlu0 %1553 }
 0x53e   : > { %v1564_v51 = vpop.permute.xlu1 %1563  ;;  %v1567_v16 = vmul.f32 %v1554_v30, %v1543_v60 }
 0x53f   : > { %v1585_v37 = vld [vmem:[#allocation3 + $0x18] sm:$0xff]  ;;  %v1569_v33 = vmul.f32 %v1564_v51, %v1545_v45  ;;  %v1627_v51 = vunpack.c.l.bf16 %v1626_v39 }
 0x540   : > { %3229 = vrcp.f32 %v1585_v37  ;;  %v1325_v37 = vld [vmem:[#allocation5 + $0x18] sm:$0xff] }
 0x542   : > { %v3224_v41 = vpop.eup %3223 }
 0x543   : > { %1600 = vperm.xlu1 %3195, %v3224_v41  }
 0x546   : > { %v3226_v42 = vpop.eup %3225 }
 0x547   : > { %1605 = vperm.xlu1 %3195, %v3226_v42   ;;  %v3228_v22 = vpop.eup %3227 }
 0x54a   : > { %v3230_v44 = vpop.eup %3229 }
 0x54b   : > { %1610 = vperm.xlu1 %3195, %v3228_v22  }
 0x54f   : > { %1615 = vperm.xlu1 %3195, %v3230_v44  }
 0x554   : > { %v2640_v32 = vpop.f32.mrb[0].mxu0 }
 0x555   : > { %v1398_v53 = vadd.f32 %v2640_v32, %v1345_v13  ;;  %v1381_v31 = vpop.f32.mrb[1].mxu0 }
 0x556   : > { %v1396_v48 = vadd.f32 %v1381_v31, %v1343_v12  ;;  %v2641_v18 = vpop.f32.mrb[2].mxu0 }
 0x557   : > { %1403 = vst.msk [vmem:[#allocation6 + $0x10] sm:$0xff] %vm1400_vm7, %v1398_v53  ;;  %v1399_v54 = vadd.f32 %v2641_v18, %v1346_v23  ;;  %v1384_v26 = vpop.f32.mrb[3].mxu0  ;;  %v3357_v18 = vmov 0.0|0.0  }
 0x558   : > { %1401 = vst.msk [vmem:[#allocation6] sm:$0xff] %vm1400_vm7, %v1396_v48  ;;  %v1397_v27 = vadd.f32 %v1384_v26, %v1344_v17  ;;  %v3359_v26 = vmov 0.0  }
 0x559   : > { %1404 = vst.msk [vmem:[#allocation6 + $0x18] sm:$0xff] %vm1400_vm7, %v1399_v54 }
 0x55a   : > { %1402 = vst.msk [vmem:[#allocation6 + $0x8] sm:$0xff] %vm1400_vm7, %v1397_v27 }
 0x55e   : > { %v1764_v4 = vld [vmem:[#allocation6 + $0x10] sm:$0xff] }
 0x55f   : > { %v1762_v29 = vld [vmem:[#allocation6] sm:$0xff] }
 0x560   : > { %2672 = vmatprep.mubr.msk.f32.mxu1 %vm1400_vm7, %v1762_v29  ;;  %v1765_v9 = vld [vmem:[#allocation6 + $0x18] sm:$0xff] }
 0x561   : > { %v1763_v7 = vld [vmem:[#allocation6 + $0x8] sm:$0xff] }
 0x56a   : > { %v1329_v20 = vpop.xlane.xlu0 %1328 }
 0x56b   : > { %v1335_v43 = vadd.f32 %v1329_v20, %v1323_v50 }
 0x56d   : > { %1340 = vst.msk [vmem:[#allocation5 + $0x8] sm:$0xff] %vm1338_vm5, %v1335_v43  ;;  %v3974_v43 = vld [vmem:[%s4094_s3] sm:$0xf]  ;;  %s3360_s3 = smov 0.0  }
 0x56e   : > { %v1331_v36 = vpop.xlane.xlu0 %1330 }
 0x56f   : > { %v1336_v46 = vadd.f32 %v1331_v36, %v1324_v34  ;;  %v2102_v34 = vsel %vm2091_vm9, %v3974_v43, 0.0 }
 0x571   : > { %1341 = vst.msk [vmem:[#allocation5 + $0x10] sm:$0xff] %vm1338_vm5, %v1336_v46 }
 0x573   : > { %1326 = vadd.xlane.f32.xlu1 %v3883_v25 }
 0x574   : > { %v1630_v44 = vld [vmem:[#allocation5 + $0x8] sm:$0xff] }
 0x577   : > { %1332 = vadd.xlane.f32.xlu1 %v3887_v57 }
 0x578   : > { %v1631_v12 = vld [vmem:[#allocation5 + $0x10] sm:$0xff] }
 0x57b   : > { %2103 = vadd.xlane.f32.xlu1 %v2102_v34 }
 0x583   : > { %v2648_v8 = vpop.f32.mrb[0].mxu1 }
 0x584   : > { %v1572_v0 = vadd.f32 %v2648_v8, %v1568_v52  ;;  %v1527_v47 = vpop.f32.mrb[1].mxu1 }
 0x585   : > { %v1570_v15 = vadd.f32 %v1566_v61, %v1527_v47  ;;  %v2649_v62 = vpop.f32.mrb[2].mxu1 }
 0x586   : > { %1576 = vst.msk [vmem:[#allocation4 + $0x10] sm:$0xff] %vm1400_vm7, %v1572_v0  ;;  %v1573_v25 = vadd.f32 %v2649_v62, %v1569_v33  ;;  %v1530_v5 = vpop.f32.mrb[3].mxu1 }
 0x587   : > { %1574 = vst.msk [vmem:[#allocation4] sm:$0xff] %vm1400_vm7, %v1570_v15  ;;  %v1571_v57 = vadd.f32 %v1567_v16, %v1530_v5 }
 0x588   : > { %1577 = vst.msk [vmem:[#allocation4 + $0x18] sm:$0xff] %vm1400_vm7, %v1573_v25 }
 0x589   : > { %1575 = vst.msk [vmem:[#allocation4 + $0x8] sm:$0xff] %vm1400_vm7, %v1571_v57 }
 0x58d   : > { %v1596_v35 = vld [vmem:[#allocation4 + $0x10] sm:$0xff] }
 0x58e   : > { %v1594_v56 = vld [vmem:[#allocation4] sm:$0xff] }
 0x58f   : > { %v1597_v21 = vld [vmem:[#allocation4 + $0x18] sm:$0xff] }
 0x590   : > { %v1595_v63 = vld [vmem:[#allocation4 + $0x8] sm:$0xff] }
 0x5c2   : > { %v1601_v14 = vpop.permute.xlu1 %1600 }
 0x5c3   : > { %v1618_v58 = vmul.f32 %v1601_v14, %v1594_v56  ;;  %v2139_v56 = vmul.f32 %v3974_v43, %v3974_v43 }
 0x5c5   : > { %1622 = vst.msk [vmem:[#allocation4] sm:$0xff] %vm1400_vm7, %v1618_v58  ;;  %1633 = vxpose.xlu0.b32.start [1/4] (short) (narrow) %v1618_v58, 32 }
 0x5c6   : > { %v1606_v6 = vpop.permute.xlu1 %1605 }
 0x5c7   : > { %v1619_v2 = vmul.f32 %v1606_v6, %v1595_v63  ;;  %v2140_v6 = vsel %vm2091_vm9, %v2139_v56, 0.0 }
 0x5c9   : > { %1623 = vst.msk [vmem:[#allocation4 + $0x8] sm:$0xff] %vm1400_vm7, %v1619_v2  ;;  %1634 = vxpose.xlu0.b32.cont [2/4] (short) (narrow) %v1619_v2, 32  ;;  %v2738_v3 = vpack.c.bf16 %v1619_v2, %v1618_v58 }
 0x5ca   : > { %v1611_v10 = vpop.permute.xlu1 %1610 }
 0x5cb   : > { %v1620_v24 = vmul.f32 %v1611_v10, %v1596_v35  ;;  %2739 = vmatprep.subr.bf16.mxu1 %v2738_v3 }
 0x5cc   : > { %2741 = vmatpush3.bf16.msra.mxu1 %v2738_v3 }
 0x5cd   : > { %1624 = vst.msk [vmem:[#allocation4 + $0x10] sm:$0xff] %vm1400_vm7, %v1620_v24  ;;  %1635 = vxpose.xlu0.b32.cont [3/4] (short) (narrow) %v1620_v24, 32 }
 0x5ce   : > { %v1616_v1 = vpop.permute.xlu1 %1615 }
 0x5cf   : > { %v1621_v55 = vmul.f32 %v1616_v1, %v1597_v21 }
 0x5d1   : > { %1625 = vst.msk [vmem:[#allocation4 + $0x18] sm:$0xff] %vm1400_vm7, %v1621_v55  ;;  %1636 = vxpose.xlu0.b32.end [4/4] (short) (narrow) %v1621_v55, 32  ;;  %v2742_v28 = vpack.c.bf16 %v1621_v55, %v1620_v24 }
 0x5d3   : > { %2743 = vmatprep.subr.bf16.mxu1 %v2742_v28 }
 0x5d4   : > { %2745 = vmatpush3.bf16.msra.mxu1 %v2742_v28 }
 0x5d5   : > { %2754 = vmatprep.subr.bf16.mxu1 %v3357_v18 }
 0x5d7   : > { %2673 = vmatmul.mubr.msk.f32.vlgmr.msra.gmra.mrb[4].mxu1 %vm1400_vm7, %v1763_v7 }
 0x5d8   : > { %2675 = vmatprep.mubr.msk.f32.mxu1 %vm1400_vm7, %v1764_v4 }
 0x5db   : > { %2676 = vmatmul.mubr.msk.f32.gmra.mrb[6].mxu1 %vm1400_vm7, %v1765_v9 }
 0x5dc   : > { %2700 = vmatprep.mubr.msk.f32.mxu1 %vm3358_vm8, %v3359_v26 }
 0x600   : > { %v1327_v49 = vpop.xlane.xlu1 %1326 }
 0x601   : > { %v1334_v19 = vadd.f32 %v1327_v49, %v1322_v59 }
 0x603   : > { %1339 = vst.msk [vmem:[#allocation5] sm:$0xff] %vm1338_vm5, %v1334_v19 }
 0x604   : > { %v1333_v41 = vpop.xlane.xlu1 %1332 }
 0x605   : > { %v1337_v42 = vadd.f32 %v1333_v41, %v1325_v37 }
 0x607   : > { %1342 = vst.msk [vmem:[#allocation5 + $0x18] sm:$0xff] %vm1338_vm5, %v1337_v42 }
 0x608   : > { %v2104_v63 = vpop.xlane.xlu1 %2103 }
 0x609   : > { %v2105_v2 = vrot.slane %v2104_v63, 4 }
 0x60a   : > { %v1629_v22 = vld [vmem:[#allocation5] sm:$0xff] }
 0x60b   : > { %v2730_v13 = vpack.c.bf16 %v1630_v44, %v1629_v22  ;;  %v2106_v3 = vadd.f32 %v2105_v2, %v2104_v63 }
 0x60d   : > { %2731 = vmatprep.subr.bf16.mxu0 %v2730_v13  ;;  %v2107_v10 = vrot.slane %v2106_v3, 2 }
 0x60e   : > { %2733 = vmatpush3.bf16.msra.mxu0 %v2730_v13  ;;  %v1632_v32 = vld [vmem:[#allocation5 + $0x18] sm:$0xff] }
 0x60f   : > { %v2734_v23 = vpack.c.bf16 %v1632_v32, %v1631_v12  ;;  %v2108_v1 = vadd.f32 %v2107_v10, %v2106_v3 }
 0x611   : > { %2735 = vmatprep.subr.bf16.mxu0 %v2734_v23  ;;  %v2109_v28 = vrot.slane %v2108_v1, 1 }
 0x612   : > { %2737 = vmatpush3.bf16.msra.mxu0 %v2734_v23 }
 0x613   : > { %v2110_v9 = vadd.f32 %v2109_v28, %v2108_v1 }
 0x645   : > { %v1649_v53 = vpop.trf.xlu0 }
 0x646   : > { %2658 = vmatprep.mubr.msk.f32.mxu0 %vm1400_vm7, %v1649_v53 }
 0x649   : > { %v1650_v31 = vpop.trf.xlu0 }
 0x64a   : > { %2659 = vmatmul.mubr.msk.f32.vlgmr.msra.gmra.mrb[4].mxu0 %vm1400_vm7, %v1650_v31 }
 0x64d   : > { %v1651_v17 = vpop.trf.xlu0 }
 0x64e   : > { %2661 = vmatprep.mubr.msk.f32.mxu0 %vm1400_vm7, %v1651_v17 }
 0x651   : > { %v1652_v48 = vpop.trf.xlu0 }
 0x652   : > { %2662 = vmatmul.mubr.msk.f32.gmra.mrb[6].mxu0 %vm1400_vm7, %v1652_v48 }
 0x653   : > { %2686 = vmatprep.mubr.msk.f32.mxu0 %vm1400_vm7, %v1649_v53 }
 0x6aa   : > { %v2674_v54 = vpop.f32.mrb[4].mxu1 }
 0x6ab   : > { %v1844_v27 = vpop.f32.mrb[5].mxu1 }
 0x6ac   : > { %v2746_v29 = vpack.c.bf16 %v2674_v54, %v1844_v27 }
 0x6ae   : > { %v2677_v30 = vpop.f32.mrb[6].mxu1  ;;  %2747 = vmatprep.subr.bf16.mxu0 %v2746_v29 }
 0x6af   : > { %v1854_v50 = vpop.f32.mrb[7].mxu1  ;;  %2749 = vmatpush3.bf16.msra.mxu0 %v2746_v29 }
 0x6b0   : > { %v2750_v20 = vpack.c.bf16 %v2677_v30, %v1854_v50 }
 0x6b2   : > { %2751 = vmatprep.subr.bf16.mxu0 %v2750_v20 }
 0x6b3   : > { %2753 = vmatpush3.bf16.msra.mxu0 %v2750_v20 }
 0x6b4   : > { %2760 = vmatprep.subr.bf16.mxu0 %v3357_v18 }
 0x6b6   : > { %2687 = vmatmul.mubr.msk.f32.vlgmr.msra.gmra.mrb[8].mxu0 %vm1400_vm7, %v1650_v31 }
 0x6b7   : > { %2689 = vmatprep.mubr.msk.f32.mxu0 %vm1400_vm7, %v1651_v17 }
 0x6ba   : > { %2690 = vmatmul.mubr.msk.f32.gmra.mrb[10].mxu0 %vm1400_vm7, %v1652_v48 }
 0x6bb   : > { %2711 = vmatprep.mubr.msk.f32.mxu0 %vm3358_vm8, %v3359_v26 }
 0x71d   : > { %v2660_v36 = vpop.f32.mrb[4].mxu0 }
 0x71e   : > { %v1743_v46 = vpop.f32.mrb[5].mxu0 }
 0x71f   : > { %v2755_v11 = vpack.c.bf16 %v2660_v36, %v1743_v46 }
 0x721   : > { %2756 = vmatpush3.bf16.msra.mxu1 %v2755_v11 }
 0x722   : > { %2757 = vmatprep.subr.bf16.mxu1 %v3357_v18 }
 0x725   : > { %v2663_v38 = vpop.f32.mrb[6].mxu0 }
 0x726   : > { %v1753_v40 = vpop.f32.mrb[7].mxu0 }
 0x727   : > { %v2758_v45 = vpack.c.bf16 %v2663_v38, %v1753_v40 }
 0x729   : > { %2759 = vmatpush3.bf16.msra.mxu1 %v2758_v45 }
 0x72c   : > { %2701 = vmatmul.mubr.msk.f32.vlgmr.msra.gmra.mrb[8].mxu1 %vm1400_vm7, %v1627_v51 }
 0x789   : > { %v2688_v52 = vpop.f32.mrb[8].mxu0 }
 0x78a   : > { %v1929_v60 = vpop.f32.mrb[9].mxu0 }
 0x78b   : > { %v2761_v61 = vpack.c.bf16 %v2688_v52, %v1929_v60 }
 0x78d   : > { %v2691_v8 = vpop.f32.mrb[10].mxu0  ;;  %2762 = vmatpush3.bf16.msra.mxu0 %v2761_v61 }
 0x78e   : > { %v1939_v33 = vpop.f32.mrb[11].mxu0  ;;  %2763 = vmatprep.subr.bf16.mxu0 %v3357_v18 }
 0x78f   : > { %v2764_v0 = vpack.c.bf16 %v2691_v8, %v1939_v33 }
 0x791   : > { %2765 = vmatpush3.bf16.msra.mxu0 %v2764_v0 }
 0x794   : > { %2712 = vmatmul.mubr.msk.f32.vlgmr.msra.gmra.mrb[12].mxu0 %vm1400_vm7, %v1627_v51 }
 0x7ff   : > { %v2017_v47 = vpop.f32.mrb[8].mxu1 }
 0x800   : > { %v2126_v16 = vmul.f32 %v2017_v47, %v3974_v43  ;;  %v2092_v15 = vsel %vm2091_vm9, %v2017_v47, 0.0  ;;  %v2702_v62 = vpop.f32.mrb[9].mxu1 }
 0x801   : > { %2093 = vadd.xlane.f32.xlu1 %v2092_v15 }
 0x802   : > { %v2127_v25 = vsel %vm2091_vm9, %v2126_v16, 0.0 }
 0x805   : > { %2128 = vadd.xlane.f32.xlu1 %v2127_v25 }
 0x867   : > { %v2087_v5 = vpop.f32.mrb[12].mxu0 }
 0x868   : > { %v2114_v57 = vmul.f32 %v2087_v5, %v1627_v51  ;;  %v2713_v14 = vpop.f32.mrb[13].mxu0 }
 0x86a   : > { %v2116_v58 = vsel %vm2115_vm10, %v2114_v57, 0.0 }
 0x86b   : > { %2117 = vadd.xlane.f32.xlu1 %v2116_v58 }
 0x86f   : > { %2141 = vadd.xlane.f32.xlu1 %v2140_v6 }
 0x88e   : > { %v2094_v35 = vpop.xlane.xlu1 %2093 }
 0x88f   : > { %v2095_v24 = vrot.slane %v2094_v35, 4 }
 0x891   : > { %v2096_v21 = vadd.f32 %v2095_v24, %v2094_v35 }
 0x892   : > { %v2129_v49 = vpop.xlane.xlu1 %2128 }
 0x893   : > { %v2097_v55 = vrot.slane %v2096_v21, 2  ;;  %v2130_v19 = vrot.slane %v2129_v49, 4 }
 0x895   : > { %v2098_v7 = vadd.f32 %v2097_v55, %v2096_v21  ;;  %v2131_v37 = vadd.f32 %v2130_v19, %v2129_v49 }
 0x897   : > { %v2099_v4 = vrot.slane %v2098_v7, 1  ;;  %v2132_v41 = vrot.slane %v2131_v37, 2 }
 0x899   : > { %v2100_v59 = vadd.f32 %v2099_v4, %v2098_v7  ;;  %v2133_v12 = vadd.f32 %v2132_v41, %v2131_v37 }
 0x89b   : > { %2766 = vpush %v2100_v59  ;;  %v2134_v17 = vrot.slane %v2133_v12, 1 }
 0x89c   : > { %2768 = vpush %v2110_v9 }
 0x89d   : > { %v2135_v27 = vadd.f32 %v2134_v17, %v2133_v12 }
 0x8cc   : > { %s2767_s29 = spop %2766 }
 0x8cd   : > { %s2769_s14 = spop %2768 }
 0x8ce   : > { %s2112_s26 = smul.f32 432.0, %s2769_s14 }
 0x8d0   : > { %s2113_s30 = sadd.f32 %s2767_s29, %s2112_s26  ;;  %s3361_s29 = smov 127  }
 0x8d2   : > { %s2154_s10 = smul.f32 0.0005787037, %s2113_s30 }
 0x8d4   : > { %s2158_s23 = smul.f32 %s2154_s10, %s2154_s10  ;;  %v2172_v46 = vstv %s2154_s10 }
 0x8d5   : > { %v2173_v11 = vsub.f32 %v3974_v43, %v2172_v46 }
 0x8f8   : > { %v2118_v42 = vpop.xlane.xlu1 %2117 }
 0x8f9   : > { %v2119_v22 = vrot.slane %v2118_v42, 4 }
 0x8fb   : > { %v2120_v44 = vadd.f32 %v2119_v22, %v2118_v42 }
 0x8fc   : > { %v2142_v13 = vpop.xlane.xlu1 %2141 }
 0x8fd   : > { %v2121_v32 = vrot.slane %v2120_v44, 2  ;;  %v2143_v23 = vrot.slane %v2142_v13, 4 }
 0x8ff   : > { %v2144_v53 = vadd.f32 %v2143_v23, %v2142_v13  ;;  %v2122_v31 = vadd.f32 %v2121_v32, %v2120_v44 }
 0x901   : > { %v2145_v48 = vrot.slane %v2144_v53, 2  ;;  %v2123_v18 = vrot.slane %v2122_v31, 1 }
 0x903   : > { %v2124_v54 = vadd.f32 %v2123_v18, %v2122_v31  ;;  %v2146_v26 = vadd.f32 %v2145_v48, %v2144_v53 }
 0x905   : > { %2770 = vpush %v2124_v54  ;;  %v2147_v29 = vrot.slane %v2146_v26, 1 }
 0x906   : > { %2772 = vpush %v2135_v27 }
 0x907   : > { %v2148_v30 = vadd.f32 %v2147_v29, %v2146_v26 }
 0x909   : > { %2774 = vpush %v2148_v30 }
 0x936   : > { %s2771_s6 = spop %2770 }
 0x937   : > { %s2773_s8 = spop %2772 }
 0x938   : > { %s2137_s9 = smul.f32 2.0, %s2773_s8 }
 0x93a   : > { %s2775_s11 = spop %2774  ;;  %s2138_s28 = sadd.f32 %s2771_s6, %s2137_s9 }
 0x93b   : > { %s2150_s27 = smul.f32 432.0, %s2775_s11 }
 0x93d   : > { %s2151_s13 = sadd.f32 %s2150_s27, %s2138_s28 }
 0x93f   : > { %s2157_s0 = smul.f32 0.0005787037, %s2151_s13 }
 0x941   : > { %s2159_s1 = ssub.f32 %s2157_s0, %s2158_s23  ;;  %s3362_s0 = smov 2  }
 0x943   : > { %s2160_s22 = smax.f32 %s3360_s3, %s2159_s1  ;;  %s3363_s1 = smov 126  }
 0x944   : > { %s2161_s21 = sadd.f32 1e-05, %s2160_s22 }
 0x946   : > { %v2162_v50 = vstv %s2161_s21 }
 0x947   : > { %3231 = vrsqrt.f32 %v2162_v50 }
 0x951   : > { %v3232_v20 = vpop.eup %3231 }
 0x952   : > { %2776 = vpush %v3232_v20 }
 0x983   : > { %s2777_s14 = spop %2776 }
 0x984   : > { %v2165_v34 = vstv %s2777_s14 }
 0x985   : > { %v2166_v36 = vmul.f32 %v2165_v34, %v3974_v43 }
 0x987   : > { %2168 = vrot.lane.b32.xlu1 %v2166_v36, %s3361_s29 }
 0x9f9   : > { %v2169_v38 = vpop.permute.xlu1 %2168 }
 0x9fa   : > { %2171 = vst.msk [vmem:[#allocation8] sm:$0xf] %vm2091_vm9, %v2169_v38  ;;  %v2174_v39 = vmul.f32 %v2173_v11, %v2169_v38 }
 0x9fc   : > { %2176 = vrot.lane.b32.xlu1 %v2174_v39, %s3362_s0 }
 0xa6e   : > { %v2177_v40 = vpop.permute.xlu1 %2176 }
 0xa6f   : > { %v2179_v45 = vadd.f32 %v2177_v40, %v3974_v43 }
 0xa71   : > { %2181 = vrot.lane.b32.xlu1 %v2179_v45, %s3363_s1 }
 0xae3   : > { %v2182_v51 = vpop.permute.xlu1 %2181 }
 0xae4   : > { %2184 = vst.msk [vmem:[#allocation9] sm:$0xf] %vm2091_vm9, %v2182_v51 }
 0xae5 PF: > { %p2489_p6 = scmp.ne.s32.totalorder %s3325_s19, 1 }
 0xae6   : > { %v2194_v52 = vld [vmem:[#allocation4] sm:$0xff] (!%p2489_p6)  ;;  %v2195_v60 = vld [vmem:[#allocation4 + $0x8] sm:$0xff] (!%p2489_p6)  ;;  %v2196_v61 = vld [vmem:[#allocation4 + $0x10] sm:$0xff] (!%p2489_p6)  ;;  %s2502_s3 = sshll.u32 (!%p2489_p6), %s3321_s18, 4  ;;  %vm2216_vm11 = vcmask (!%p2489_p6), 261120   ;;  %v3364_v62 = vmov (!%p2489_p6), 0.0  }
 0xae7   : > { %2188 = sbr.rel (%p2489_p6) target bundleno = 3341 (0xd0d), region = 56  ;;  %v2198_v8 = vpack.c.bf16 (!%p2489_p6), %v2195_v60, %v2194_v52  ;;  %v2197_v33 = vld [vmem:[#allocation4 + $0x18] sm:$0xff] (!%p2489_p6)  ;;  %s2191_s21 = scalar_lea.vmem (!%p2489_p6), [#allocation7], %s2502_s3  ;;  %2722 = vmatprep.subr.bf16.mxu1 (!%p2489_p6), %v3364_v62  ;;  %vm3365_vm12 = vmmov (!%p2489_p6), 0   ;;  %v2318_v25 = vld [vmem:[#allocation8] sm:$0xf] (!%p2489_p6) }
 0xae8   : > { %v2192_v0 = vld [vmem:[%s2191_s21] sm:$0xff] (!%p2489_p6)  ;;  %v2193_v43 = vld [vmem:[%s2191_s21 + $0x8] sm:$0xff] (!%p2489_p6)  ;;  %v2199_v47 = vpack.c.bf16 (!%p2489_p6), %v2197_v33, %v2196_v61  ;;  %2726 = vmatprep.mubr.msk.bf16.mxu1 (!%p2489_p6), %vm3365_vm12, %v3364_v62  ;;  %v3366_v5 = vmov (!%p2489_p6), 0   ;;  %s4095_s13 = scalar_lea.vmem (!%p2489_p6), [#allocation10], %s3484_s25 }
 0xae9   : > { %2200 = vxpose.xlu0.c.b16.start [1/2] (short) (narrow) (!%p2489_p6), %v2198_v8, 32  ;;  %2714 = vmatprep.subr.bf16.mxu0 (!%p2489_p6), %v2192_v0  ;;  %v2272_v3 = vld [vmem:[%s4068_s2] sm:$0x3] (!%p2489_p6) }
 0xaea   : > { %2715 = vmatpush3.bf16.msra.mxu0 (!%p2489_p6), %v2192_v0  ;;  %3233 = vset.pattern.permute.xlu1 (!%p2489_p6), %v3366_v5 }
 0xaeb   : > { %2716 = vmatprep.subr.bf16.mxu0 (!%p2489_p6), %v2193_v43  ;;  %2321 = vperm.xlu1 (!%p2489_p6), %3233, %v2318_v25   ;;  %v2325_v57 = vld [vmem:[#allocation9] sm:$0xf] (!%p2489_p6) }
 0xaed   : > { %2201 = vxpose.xlu0.c.b16.end [2/2] (short) (narrow) (!%p2489_p6), %v2199_v47, 32 }
 0xaee   : > { %2717 = vmatpush3.bf16.msra.mxu0 %v2193_v43 }
 0xaef   : > { %2328 = vperm.xlu1 %3233, %v2325_v57  }
 0xaf6   : > { %3234 = vset.pattern.permute.xlu0 %v3366_v5 }
 0xb4f   : > { %v2208_v16 = vpop.trf.xlu0 }
 0xb50   : > { %2718 = vmatprep.mubr.msk.bf16.mxu0 %vm2216_vm11, %v2208_v16 }
 0xb53   : > { %v2209_v15 = vpop.trf.xlu0 }
 0xb54   : > { %2719 = vmatmul.mubr.msk.bf16.vlgmr.msra.gmra.mrb[0].mxu0 %vm2216_vm11, %v2209_v15 }
 0xb6a   : > { %v2322_v10 = vpop.permute.xlu1 %2321 }
 0xb6e   : > { %v2329_v21 = vpop.permute.xlu1 %2328 }
 0xc27   : > { %v2720_v14 = vpop.f32.mrb[0].mxu0 }
 0xc28   : > { %v2257_v56 = vpop.f32.mrb[1].mxu0 }
 0xc29   : > { %v2721_v58 = vpop.f32.mrb[2].mxu0 }
 0xc2a   : > { %v2274_v6 = vpack.c.bf16 %v2721_v58, %v2720_v14  ;;  %v2260_v63 = vpop.f32.mrb[3].mxu0 }
 0xc2b   : > { %v2273_v2 = vpack.c.bf16 %v2260_v63, %v2257_v56 }
 0xc2d   : > { %2723 = vmatpush3.bf16.msra.mxu1 %v2273_v2 }
 0xc2e   : > { %2724 = vmatprep.subr.bf16.mxu1 %v3364_v62 }
 0xc31   : > { %2725 = vmatpush3.bf16.msra.mxu1 %v2274_v6 }
 0xc34   : > { %2727 = vmatmul.mubr.msk.bf16.vlgmr.msra.gmra.mrb[0].mxu1 %vm2216_vm11, %v2272_v3 }
 0xd07   : > { %v2312_v35 = vpop.f32.mrb[0].mxu1 }
 0xd08   : > { %v2324_v24 = vmul.f32 %v2322_v10, %v2312_v35  ;;  %v2728_v1 = vpop.f32.mrb[1].mxu1 }
 0xd09   : > { %v2315_v55 = vpop.f32.mrb[2].mxu1 }
 0xd0a   : > { %v2331_v28 = vadd.f32 %v2329_v21, %v2324_v24  ;;  %v2729_v7 = vpop.f32.mrb[3].mxu1 }
 0xd0c   : > { %2332 = vst [vmem:[%s4095_s13] sm:$0xf] %v2331_v28 }
 0xd0d PF: > { %s2341_s26 = smul.u32 %s3321_s18, %s3325_s19  ;;  %s2496_s30 = sshll.u32 %s3329_s20, 2 }
 0xd0e   : > { %s4096_s6 = scalar_lea.vmem [#allocation10], %s3484_s25  ;;  %s4097_s14 = sand.u32 1, %s3313_s16  }
 0xd0f   : > { %s2350_s8 = sshll.u32 %s4096_s6, 4  ;;  %s2346_s9 = sadd.s32 %s2496_s30, %s2341_s26  ;;  %s4009_s8 = int_to_ptr.vmem [resolvable:$true] %s2350_s8 }
 0xd10   : > { %s2497_s10 = sshll.u32 %s2346_s9, 6  ;;  %s2334_s29 = scalar_lea.sflag [#allocation11], %s4097_s14 }
 0xd11   : > { %s2348_s27 = scalar_lea.hbm %s4070_s4, %s2497_s10  ;;  %s3235_s0 = scalar_lea.vmem %s4009_s8, 64 }
 0xd12   : > { %p3236_p8 = scmp.ne.s32.totalorder %s4009_s8, %s3235_s0  ;;  %s3367_s18 = smov [#allocation10]  }
 0xd13   : > { %s3239_s19 = sshll.u32 %s3367_s18, 4  ;;  %s3240_s19 = int_to_ptr.vmem [resolvable:$false] %s3239_s19 }
 0xd14   : > { %p3237_p9 = pnand %p3236_p8, %p3457_p5  ;;  %s3241_s20 = scalar_lea.vmem %s3240_s19, 128 }
 0xd15   : > { %p3242_p11 = scmp.lt.s32.totalorder %s4009_s8, %s3240_s19  ;;  %p3243_p12 = scmp.lt.s32.totalorder %s3241_s20, %s3235_s0 }
 0xd16   : > { %p3238_p10 = pneg %p3237_p9 }
 0xd17   : > { %p3244_p13 = por %p3243_p12, %p3242_p11 }
 0xd19   : > { %p3245_p0 = pnand %p3244_p13, %p3238_p10 }
 0xd1b   : > { %3248 = shalt.err (!%p3245_p0)
}
 0xd1c   : > { %s3249_s25 = scalar_lea.hbm %s2348_s27, 64  ;;  %s3253_s21 = scalar_lea.hbm %s4070_s4, 512 }
 0xd1d   : > { %p3250_p1 = scmp.ne.s32.totalorder %s2348_s27, %s3249_s25  ;;  %p3254_p4 = scmp.lt.u32.totalorder %s2348_s27, %s4070_s4 }
 0xd1e   : > { %p3255_p6 = scmp.lt.u32.totalorder %s3253_s21, %s3249_s25  ;;  %p3257_p9 = scmp.lt.u32.totalorder %s3249_s25, %s2348_s27 }
 0xd1f   : > { %p3251_p2 = pnand %p3250_p1, %p3457_p5 }
 0xd20   : > { %p3256_p8 = por %p3255_p6, %p3254_p4 }
 0xd21   : > { %p3252_p3 = pneg %p3251_p2 }
 0xd22   : > { %p3258_p11 = por %p3257_p9, %p3256_p8 }
 0xd24   : > { %p3259_p10 = pnand %p3258_p11, %p3252_p3 }
 0xd26   : > { %3262 = shalt.err (!%p3259_p10)
}
 0xd27   : > { %2778 = dma.vmem_to_hbm [thread:$0]  (%p3457_p5), %s4009_s8, 64, %s2348_s27, %s2334_s29  }
 0xd28 PF: > { %p2784_p12 = scmp.ge.s32.totalorder %s3345_s24, 2  ;;  %s2362_s13 = sand.u32 1, %s3309_s15  }
 0xd29   : > { %s2363_s26 = scalar_lea.sflag [#allocation11], %s2362_s13 }
 0xd2a   : > { %p2781_p13 = pnand %p2784_p12, %p3466_p7 }
 0xd2c   : > { %3304 = dma.done.wait (!%p2781_p13), %s2363_s26, 64  }
 0xd2d   : > { %3306 = vsyncadd (!%p2781_p13), %s2363_s26, 4294967232  ;;  %s17_s24 = sadd.s32 1, %s3345_s24   ;;  %s4098_s18 = sld [smem:[#allocation13_spill]] }
 0xd2e   : > { %p14_p0 = scmp.ge.s32.totalorder %s17_s24, 18   ;;  %s4099_s19 = sld [smem:[#allocation14_spill]] }
 0xd2f   : > { %s4100_s20 = sld [smem:[#allocation15_spill]]  ;;  %s4101_s21 = sld [smem:[#allocation16_spill]] }
 0xd30   : > { %s4102_s22 = sld [smem:[#allocation17_spill]]  ;;  %s4103_s23 = sld [smem:[#allocation18_spill]] }
 0xd31   : > { %s4104_s15 = smov %s3313_s16  ;;  %s4105_s16 = smov %s3317_s17 }
 0xd32   : > { %s4106_s17 = smov %s3478_s12  ;;  %16 = sbr.rel (!%p14_p0) target bundleno = 10 (0xa), region = 94 }
 0xd39   :  { %2368 = vsyncpa [#allocation11], 1 }
 0xd3a   :  { %2370 = vsyncpa [#allocation11 + $0x1], 1 }

</bundles_post_ra>
